<compile_context>
chip_gen: v7x
topology: tpu7x:2x2x1
jax: 0.10.0
libtpu: 0.0.40
codegen_flags: <defaults>
</compile_context>

<pallas_src>
import math
import numpy as np
import jax
import jax.numpy as jnp
from jax.experimental import pallas as pl
from jax.experimental.pallas import tpu as pltpu

# ----- small, module-consistent config -----
B = 2            # batch
S = 8            # seq_len
D = 32           # d_model
H = 4            # num_heads
HD = D // H      # head_dim
D_FF = 64        # d_ff
EPS = 1e-5       # nn.LayerNorm default eps
INV_SQRT2 = 1.0 / math.sqrt(2.0)


def _make_kernel(bb):
    """Kernel processing `bb` batch elements per grid step (bb*S rows)."""
    bh = bb * H

    def kernel(x_ref,
               ln1w_ref, ln1b_ref,
               wq_ref, bq_ref, wk_ref, bk_ref, wv_ref, bv_ref,
               wo_ref, bo_ref,
               ln2w_ref, ln2b_ref,
               w1_ref, b1_ref, w2_ref, b2_ref,
               o_ref):
        x = x_ref[...]                                        # (bb*S, D) f32

        # ---- LayerNorm 1 ----
        mu = jnp.mean(x, axis=-1, keepdims=True)
        var = jnp.mean((x - mu) ** 2, axis=-1, keepdims=True)
        n1 = (x - mu) * jax.lax.rsqrt(var + EPS) * ln1w_ref[...] + ln1b_ref[...]

        # ---- Multi-head self-attention (heads = leading batch dim) ----
        # Replicate normed activations across the head axis; the (S, D) minor
        # dims never change, so this is leading-dim-only bookkeeping.
        n1_bh = jnp.broadcast_to(n1.reshape(bb, 1, S, D),
                                 (bb, H, S, D)).reshape(bh, S, D)
        q = jnp.einsum('bsd,bde->bse', n1_bh, wq_ref[...],
                       preferred_element_type=jnp.float32) + bq_ref[...]
        k = jnp.einsum('bsd,bde->bse', n1_bh, wk_ref[...],
                       preferred_element_type=jnp.float32) + bk_ref[...]
        v = jnp.einsum('bsd,bde->bse', n1_bh, wv_ref[...],
                       preferred_element_type=jnp.float32) + bv_ref[...]

        # scores; 1/sqrt(head_dim) already folded into wq / bq.
        s = jnp.einsum('bqe,bke->bqk', q, k,
                       preferred_element_type=jnp.float32)    # (bh, S, S)
        s = s - jnp.max(s, axis=-1, keepdims=True)
        p = jnp.exp(s)
        p = p / jnp.sum(p, axis=-1, keepdims=True)
        ctx = jnp.einsum('bqk,bke->bqe', p, v,
                         preferred_element_type=jnp.float32)  # (bh, S, HD)

        # Per-head slice of the output projection, then reduce over heads.
        t = jnp.einsum('bse,bed->bsd', ctx, wo_ref[...],
                       preferred_element_type=jnp.float32)    # (bh, S, D)
        attn = jnp.sum(t.reshape(bb, H, S, D), axis=1).reshape(bb * S, D)
        attn = attn + bo_ref[...]

        h1 = x + attn                                         # residual 1

        # ---- LayerNorm 2 ----
        mu2 = jnp.mean(h1, axis=-1, keepdims=True)
        var2 = jnp.mean((h1 - mu2) ** 2, axis=-1, keepdims=True)
        n2 = (h1 - mu2) * jax.lax.rsqrt(var2 + EPS) * ln2w_ref[...] + ln2b_ref[...]

        # ---- Feed-forward: Linear -> GELU(exact erf) -> Linear ----
        ff = jnp.dot(n2, w1_ref[...], preferred_element_type=jnp.float32) + b1_ref[...]
        ff = 0.5 * ff * (1.0 + jax.lax.erf(ff * INV_SQRT2))
        ff = jnp.dot(ff, w2_ref[...], preferred_element_type=jnp.float32) + b2_ref[...]

        o_ref[...] = h1 + ff                                  # residual 2

    return kernel


def _pick_batch_block():
    """Whole batch in one grid step on single-TC chips (v5e/v6e); one batch
    element per step ('parallel' 2-wide grid) on 2-TC chips (v7x)."""
    try:
        kind = jax.devices()[0].device_kind.lower()
    except Exception:
        kind = ""
    return 1 if "7" in kind else B


def _rep(shape):
    # whole-array block, identical for every grid step
    return pl.BlockSpec(shape, lambda b: (0,) * len(shape))


def museformer_block(x, raw_params, batch_block=None):
    """x: (B, S, D) f32.  raw_params: PyTorch-layout weights (see __main__)."""
    (ln1w, ln1b, wqkv, bqkv, wo, bo, ln2w, ln2b, w1, b1, w2, b2) = raw_params

    bb = _pick_batch_block() if batch_block is None else batch_block
    assert B % bb == 0
    scale = 1.0 / math.sqrt(HD)

    def head_major(w_t):                       # (D, D) -> (H, D, HD)
        return w_t.reshape(D, H, HD).transpose(1, 0, 2)

    def tile_h(a):                             # (H, ...) -> (bb*H, ...)
        return jnp.tile(a, (bb,) + (1,) * (a.ndim - 1))

    wq_t, wk_t, wv_t = wqkv[:D].T, wqkv[D:2 * D].T, wqkv[2 * D:].T
    bq, bk, bv = bqkv[:D], bqkv[D:2 * D], bqkv[2 * D:]

    params = (
        ln1w.reshape(1, D), ln1b.reshape(1, D),
        tile_h(head_major(wq_t) * scale), tile_h((bq * scale).reshape(H, 1, HD)),
        tile_h(head_major(wk_t)),          tile_h(bk.reshape(H, 1, HD)),
        tile_h(head_major(wv_t)),          tile_h(bv.reshape(H, 1, HD)),
        tile_h(wo.T.reshape(H, HD, D)),    bo.reshape(1, D),
        ln2w.reshape(1, D), ln2b.reshape(1, D),
        w1.T, b1.reshape(1, D_FF),
        w2.T, b2.reshape(1, D),
    )

    x2 = x.reshape(B * S, D)
    in_specs = [pl.BlockSpec((bb * S, D), lambda b: (b, 0))] + \
               [_rep(p.shape) for p in params]

    out2 = pl.pallas_call(
        _make_kernel(bb),
        out_shape=jax.ShapeDtypeStruct((B * S, D), jnp.float32),
        grid=(B // bb,),
        in_specs=in_specs,
        out_specs=pl.BlockSpec((bb * S, D), lambda b: (b, 0)),
        compiler_params=pltpu.CompilerParams(dimension_semantics=("parallel",)),
    )(x2, *params)
    return out2.reshape(B, S, D)


# ---------------- pure-JAX reference (for verification) ----------------
def reference_block(x, raw):
    (ln1w, ln1b, wqkv, bqkv, wo, bo, ln2w, ln2b, w1, b1, w2, b2) = raw

    def ln(v, w, b):
        m = v.mean(-1, keepdims=True)
        var = ((v - m) ** 2).mean(-1, keepdims=True)
        return (v - m) / jnp.sqrt(var + EPS) * w + b

    n1 = ln(x, ln1w, ln1b)
    qkv = n1 @ wqkv.T + bqkv
    q, k, v = jnp.split(qkv, 3, axis=-1)
    q = q.reshape(B, S, H, HD).transpose(0, 2, 1, 3)
    k = k.reshape(B, S, H, HD).transpose(0, 2, 1, 3)
    v = v.reshape(B, S, H, HD).transpose(0, 2, 1, 3)
    s = jnp.einsum("bhqd,bhkd->bhqk", q, k) / math.sqrt(HD)
    p = jax.nn.softmax(s, axis=-1)
    attn = jnp.einsum("bhqk,bhkd->bhqd", p, v).transpose(0, 2, 1, 3).reshape(B, S, D)
    attn = attn @ wo.T + bo
    h1 = x + attn
    n2 = ln(h1, ln2w, ln2b)
    ff = jax.nn.gelu(n2 @ w1.T + b1, approximate=False) @ w2.T + b2
    return h1 + ff


if __name__ == "__main__":
    key = jax.random.PRNGKey(0)
    ks = jax.random.split(key, 12)

    def rnd(k, shape, scale=0.05):
        return jax.random.normal(k, shape, dtype=jnp.float32) * scale

    x = jax.random.normal(ks[0], (B, S, D), dtype=jnp.float32)

    # raw parameters (PyTorch shapes)
    ln1w = 1.0 + rnd(ks[1], (D,))
    ln1b = rnd(ks[2], (D,))
    wqkv = rnd(ks[3], (3 * D, D))       # in_proj_weight
    bqkv = rnd(ks[4], (3 * D,))         # in_proj_bias
    wo = rnd(ks[5], (D, D))             # out_proj.weight
    bo = rnd(ks[6], (D,))               # out_proj.bias
    ln2w = 1.0 + rnd(ks[7], (D,))
    ln2b = rnd(ks[8], (D,))
    w1 = rnd(ks[9], (D_FF, D))
    b1 = rnd(ks[10], (D_FF,))
    w2 = rnd(ks[11], (D, D_FF))
    b2 = jnp.zeros((D,), dtype=jnp.float32)

    raw = (ln1w, ln1b, wqkv, bqkv, wo, bo, ln2w, ln2b, w1, b1, w2, b2)

    out = museformer_block(x, raw)
    out = jax.block_until_ready(out)

    ref = reference_block(x, raw)
    np.testing.assert_allclose(np.asarray(out), np.asarray(ref), rtol=1e-4, atol=1e-4)

    print("KERNEL_OK")
</pallas_src>

<mosaic_0001>
module attributes {stable_mosaic.version = 11 : i64} {
  func.func @kernel(%arg0: i32, %arg1: memref<16x32xf32, #tpu.memory_space<vmem>>, %arg2: memref<1x32xf32, #tpu.memory_space<vmem>>, %arg3: memref<1x32xf32, #tpu.memory_space<vmem>>, %arg4: memref<8x32x8xf32, #tpu.memory_space<vmem>>, %arg5: memref<8x1x8xf32, #tpu.memory_space<vmem>>, %arg6: memref<8x32x8xf32, #tpu.memory_space<vmem>>, %arg7: memref<8x1x8xf32, #tpu.memory_space<vmem>>, %arg8: memref<8x32x8xf32, #tpu.memory_space<vmem>>, %arg9: memref<8x1x8xf32, #tpu.memory_space<vmem>>, %arg10: memref<8x8x32xf32, #tpu.memory_space<vmem>>, %arg11: memref<1x32xf32, #tpu.memory_space<vmem>>, %arg12: memref<1x32xf32, #tpu.memory_space<vmem>>, %arg13: memref<1x32xf32, #tpu.memory_space<vmem>>, %arg14: memref<32x64xf32, #tpu.memory_space<vmem>>, %arg15: memref<1x64xf32, #tpu.memory_space<vmem>>, %arg16: memref<64x32xf32, #tpu.memory_space<vmem>>, %arg17: memref<1x32xf32, #tpu.memory_space<vmem>>, %arg18: memref<16x32xf32, #tpu.memory_space<vmem>>) attributes {dimension_semantics = [#tpu.dimension_semantics<parallel>], iteration_bounds = array<i64: 1>, scalar_prefetch = 0 : i64, scratch_operands = 0 : i64, tpu.core_type = #tpu.core_type<tc>, window_params = [{transform_indices = @transform_0, window_bounds = array<i64: 16, 32>}, {pipeline_mode = #tpu.pipeline_mode<synchronous>, transform_indices = @transform_1, window_bounds = array<i64: 1, 32>}, {pipeline_mode = #tpu.pipeline_mode<synchronous>, transform_indices = @transform_2, window_bounds = array<i64: 1, 32>}, {pipeline_mode = #tpu.pipeline_mode<synchronous>, transform_indices = @transform_3, window_bounds = array<i64: 8, 32, 8>}, {pipeline_mode = #tpu.pipeline_mode<synchronous>, transform_indices = @transform_4, window_bounds = array<i64: 8, 1, 8>}, {pipeline_mode = #tpu.pipeline_mode<synchronous>, transform_indices = @transform_5, window_bounds = array<i64: 8, 32, 8>}, {pipeline_mode = #tpu.pipeline_mode<synchronous>, transform_indices = @transform_6, window_bounds = array<i64: 8, 1, 8>}, {pipeline_mode = #tpu.pipeline_mode<synchronous>, transform_indices = @transform_7, window_bounds = array<i64: 8, 32, 8>}, {pipeline_mode = #tpu.pipeline_mode<synchronous>, transform_indices = @transform_8, window_bounds = array<i64: 8, 1, 8>}, {pipeline_mode = #tpu.pipeline_mode<synchronous>, transform_indices = @transform_9, window_bounds = array<i64: 8, 8, 32>}, {pipeline_mode = #tpu.pipeline_mode<synchronous>, transform_indices = @transform_10, window_bounds = array<i64: 1, 32>}, {pipeline_mode = #tpu.pipeline_mode<synchronous>, transform_indices = @transform_11, window_bounds = array<i64: 1, 32>}, {pipeline_mode = #tpu.pipeline_mode<synchronous>, transform_indices = @transform_12, window_bounds = array<i64: 1, 32>}, {pipeline_mode = #tpu.pipeline_mode<synchronous>, transform_indices = @transform_13, window_bounds = array<i64: 32, 64>}, {pipeline_mode = #tpu.pipeline_mode<synchronous>, transform_indices = @transform_14, window_bounds = array<i64: 1, 64>}, {pipeline_mode = #tpu.pipeline_mode<synchronous>, transform_indices = @transform_15, window_bounds = array<i64: 64, 32>}, {pipeline_mode = #tpu.pipeline_mode<synchronous>, transform_indices = @transform_16, window_bounds = array<i64: 1, 32>}, {transform_indices = @transform_17, window_bounds = array<i64: 16, 32>}]} {
    %c0 = arith.constant 0 : index
    %c0_0 = arith.constant 0 : index
    %0 = vector.load %arg1[%c0, %c0_0] : memref<16x32xf32, #tpu.memory_space<vmem>>, vector<16x32xf32>
    %cst = arith.constant dense<0.000000e+00> : vector<16xf32>
    %1 = vector.multi_reduction <add>, %0, %cst [1] : vector<16x32xf32> to vector<16xf32>
    %2 = vector.shape_cast %1 : vector<16xf32> to vector<16x1xf32>
    %cst_1 = arith.constant 3.200000e+01 : f32
    %3 = vector.broadcast %cst_1 : f32 to vector<16x1xf32>
    %4 = arith.divf %2, %3 : vector<16x1xf32>
    %5 = vector.broadcast %4 : vector<16x1xf32> to vector<16x32xf32>
    %6 = arith.subf %0, %5 : vector<16x32xf32>
    %7 = arith.mulf %6, %6 : vector<16x32xf32>
    %cst_2 = arith.constant dense<0.000000e+00> : vector<16xf32>
    %8 = vector.multi_reduction <add>, %7, %cst_2 [1] : vector<16x32xf32> to vector<16xf32>
    %9 = vector.shape_cast %8 : vector<16xf32> to vector<16x1xf32>
    %cst_3 = arith.constant 3.200000e+01 : f32
    %10 = vector.broadcast %cst_3 : f32 to vector<16x1xf32>
    %11 = arith.divf %9, %10 : vector<16x1xf32>
    %12 = vector.broadcast %4 : vector<16x1xf32> to vector<16x32xf32>
    %13 = arith.subf %0, %12 : vector<16x32xf32>
    %cst_4 = arith.constant 9.99999974E-6 : f32
    %14 = vector.broadcast %cst_4 : f32 to vector<16x1xf32>
    %15 = arith.addf %11, %14 : vector<16x1xf32>
    %16 = math.rsqrt %15 : vector<16x1xf32>
    %17 = vector.broadcast %16 : vector<16x1xf32> to vector<16x32xf32>
    %18 = arith.mulf %13, %17 : vector<16x32xf32>
    %c0_5 = arith.constant 0 : index
    %c0_6 = arith.constant 0 : index
    %19 = vector.load %arg2[%c0_5, %c0_6] : memref<1x32xf32, #tpu.memory_space<vmem>>, vector<1x32xf32>
    %20 = vector.broadcast %19 : vector<1x32xf32> to vector<16x32xf32>
    %21 = arith.mulf %18, %20 : vector<16x32xf32>
    %c0_7 = arith.constant 0 : index
    %c0_8 = arith.constant 0 : index
    %22 = vector.load %arg3[%c0_7, %c0_8] : memref<1x32xf32, #tpu.memory_space<vmem>>, vector<1x32xf32>
    %23 = vector.broadcast %22 : vector<1x32xf32> to vector<16x32xf32>
    %24 = arith.addf %21, %23 : vector<16x32xf32>
    %25 = vector.shape_cast %24 : vector<16x32xf32> to vector<2x1x8x32xf32>
    %26 = vector.shape_cast %25 : vector<2x1x8x32xf32> to vector<2x1x8x32xf32>
    %27 = vector.broadcast %26 : vector<2x1x8x32xf32> to vector<2x4x8x32xf32>
    %28 = vector.shape_cast %27 : vector<2x4x8x32xf32> to vector<8x8x32xf32>
    %c0_9 = arith.constant 0 : index
    %c0_10 = arith.constant 0 : index
    %c0_11 = arith.constant 0 : index
    %29 = vector.load %arg4[%c0_9, %c0_10, %c0_11] : memref<8x32x8xf32, #tpu.memory_space<vmem>>, vector<8x32x8xf32>
    "tpu.trace_start"() <{level = 10 : i32, message = "bsd,bde->bse"}> : () -> ()
    %cst_12 = arith.constant dense<0.000000e+00> : vector<8x8x8xf32>
    %30 = tpu.matmul %28, %29, %cst_12 {dimension_numbers = #tpu.dot_dimension_numbers<[2], [1], [1], [2], [0, 0, 0, 1, 1, 2], [0], [0]>} : vector<8x8x32xf32>, vector<8x32x8xf32>, vector<8x8x8xf32> -> vector<8x8x8xf32>
    "tpu.trace_stop"() : () -> ()
    %c0_13 = arith.constant 0 : index
    %c0_14 = arith.constant 0 : index
    %c0_15 = arith.constant 0 : index
    %31 = vector.load %arg5[%c0_13, %c0_14, %c0_15] : memref<8x1x8xf32, #tpu.memory_space<vmem>>, vector<8x1x8xf32>
    %32 = vector.broadcast %31 : vector<8x1x8xf32> to vector<8x8x8xf32>
    %33 = arith.addf %30, %32 : vector<8x8x8xf32>
    %c0_16 = arith.constant 0 : index
    %c0_17 = arith.constant 0 : index
    %c0_18 = arith.constant 0 : index
    %34 = vector.load %arg6[%c0_16, %c0_17, %c0_18] : memref<8x32x8xf32, #tpu.memory_space<vmem>>, vector<8x32x8xf32>
    "tpu.trace_start"() <{level = 10 : i32, message = "bsd,bde->bse"}> : () -> ()
    %cst_19 = arith.constant dense<0.000000e+00> : vector<8x8x8xf32>
    %35 = tpu.matmul %28, %34, %cst_19 {dimension_numbers = #tpu.dot_dimension_numbers<[2], [1], [1], [2], [0, 0, 0, 1, 1, 2], [0], [0]>} : vector<8x8x32xf32>, vector<8x32x8xf32>, vector<8x8x8xf32> -> vector<8x8x8xf32>
    "tpu.trace_stop"() : () -> ()
    %c0_20 = arith.constant 0 : index
    %c0_21 = arith.constant 0 : index
    %c0_22 = arith.constant 0 : index
    %36 = vector.load %arg7[%c0_20, %c0_21, %c0_22] : memref<8x1x8xf32, #tpu.memory_space<vmem>>, vector<8x1x8xf32>
    %37 = vector.broadcast %36 : vector<8x1x8xf32> to vector<8x8x8xf32>
    %38 = arith.addf %35, %37 : vector<8x8x8xf32>
    %c0_23 = arith.constant 0 : index
    %c0_24 = arith.constant 0 : index
    %c0_25 = arith.constant 0 : index
    %39 = vector.load %arg8[%c0_23, %c0_24, %c0_25] : memref<8x32x8xf32, #tpu.memory_space<vmem>>, vector<8x32x8xf32>
    "tpu.trace_start"() <{level = 10 : i32, message = "bsd,bde->bse"}> : () -> ()
    %cst_26 = arith.constant dense<0.000000e+00> : vector<8x8x8xf32>
    %40 = tpu.matmul %28, %39, %cst_26 {dimension_numbers = #tpu.dot_dimension_numbers<[2], [1], [1], [2], [0, 0, 0, 1, 1, 2], [0], [0]>} : vector<8x8x32xf32>, vector<8x32x8xf32>, vector<8x8x8xf32> -> vector<8x8x8xf32>
    "tpu.trace_stop"() : () -> ()
    %c0_27 = arith.constant 0 : index
    %c0_28 = arith.constant 0 : index
    %c0_29 = arith.constant 0 : index
    %41 = vector.load %arg9[%c0_27, %c0_28, %c0_29] : memref<8x1x8xf32, #tpu.memory_space<vmem>>, vector<8x1x8xf32>
    %42 = vector.broadcast %41 : vector<8x1x8xf32> to vector<8x8x8xf32>
    %43 = arith.addf %40, %42 : vector<8x8x8xf32>
    "tpu.trace_start"() <{level = 10 : i32, message = "bqe,bke->bqk"}> : () -> ()
    %cst_30 = arith.constant dense<0.000000e+00> : vector<8x8x8xf32>
    %44 = tpu.matmul %33, %38, %cst_30 {dimension_numbers = #tpu.dot_dimension_numbers<[2], [2], [1], [1], [0, 0, 0, 1, 1, 1], [0], [0]>} : vector<8x8x8xf32>, vector<8x8x8xf32>, vector<8x8x8xf32> -> vector<8x8x8xf32>
    "tpu.trace_stop"() : () -> ()
    %cst_31 = arith.constant dense<0xFF800000> : vector<8x8xf32>
    %45 = vector.multi_reduction <maximumf>, %44, %cst_31 [2] : vector<8x8x8xf32> to vector<8x8xf32>
    %46 = vector.shape_cast %45 : vector<8x8xf32> to vector<8x8x1xf32>
    %47 = vector.broadcast %46 : vector<8x8x1xf32> to vector<8x8x8xf32>
    %48 = arith.subf %44, %47 : vector<8x8x8xf32>
    %49 = math.exp %48 : vector<8x8x8xf32>
    %cst_32 = arith.constant dense<0.000000e+00> : vector<8x8xf32>
    %50 = vector.multi_reduction <add>, %49, %cst_32 [2] : vector<8x8x8xf32> to vector<8x8xf32>
    %51 = vector.shape_cast %50 : vector<8x8xf32> to vector<8x8x1xf32>
    %52 = vector.broadcast %51 : vector<8x8x1xf32> to vector<8x8x8xf32>
    %53 = arith.divf %49, %52 : vector<8x8x8xf32>
    "tpu.trace_start"() <{level = 10 : i32, message = "bqk,bke->bqe"}> : () -> ()
    %cst_33 = arith.constant dense<0.000000e+00> : vector<8x8x8xf32>
    %54 = tpu.matmul %53, %43, %cst_33 {dimension_numbers = #tpu.dot_dimension_numbers<[2], [1], [1], [2], [0, 0, 0, 1, 1, 2], [0], [0]>} : vector<8x8x8xf32>, vector<8x8x8xf32>, vector<8x8x8xf32> -> vector<8x8x8xf32>
    "tpu.trace_stop"() : () -> ()
    %c0_34 = arith.constant 0 : index
    %c0_35 = arith.constant 0 : index
    %c0_36 = arith.constant 0 : index
    %55 = vector.load %arg10[%c0_34, %c0_35, %c0_36] : memref<8x8x32xf32, #tpu.memory_space<vmem>>, vector<8x8x32xf32>
    "tpu.trace_start"() <{level = 10 : i32, message = "bse,bed->bsd"}> : () -> ()
    %cst_37 = arith.constant dense<0.000000e+00> : vector<8x8x32xf32>
    %56 = tpu.matmul %54, %55, %cst_37 {dimension_numbers = #tpu.dot_dimension_numbers<[2], [1], [1], [2], [0, 0, 0, 1, 1, 2], [0], [0]>} : vector<8x8x8xf32>, vector<8x8x32xf32>, vector<8x8x32xf32> -> vector<8x8x32xf32>
    "tpu.trace_stop"() : () -> ()
    %57 = vector.shape_cast %56 : vector<8x8x32xf32> to vector<2x4x8x32xf32>
    %cst_38 = arith.constant dense<0.000000e+00> : vector<2x8x32xf32>
    %58 = vector.multi_reduction <add>, %57, %cst_38 [1] : vector<2x4x8x32xf32> to vector<2x8x32xf32>
    %59 = vector.shape_cast %58 : vector<2x8x32xf32> to vector<16x32xf32>
    %c0_39 = arith.constant 0 : index
    %c0_40 = arith.constant 0 : index
    %60 = vector.load %arg11[%c0_39, %c0_40] : memref<1x32xf32, #tpu.memory_space<vmem>>, vector<1x32xf32>
    %61 = vector.broadcast %60 : vector<1x32xf32> to vector<16x32xf32>
    %62 = arith.addf %59, %61 : vector<16x32xf32>
    %63 = arith.addf %0, %62 : vector<16x32xf32>
    %cst_41 = arith.constant dense<0.000000e+00> : vector<16xf32>
    %64 = vector.multi_reduction <add>, %63, %cst_41 [1] : vector<16x32xf32> to vector<16xf32>
    %65 = vector.shape_cast %64 : vector<16xf32> to vector<16x1xf32>
    %cst_42 = arith.constant 3.200000e+01 : f32
    %66 = vector.broadcast %cst_42 : f32 to vector<16x1xf32>
    %67 = arith.divf %65, %66 : vector<16x1xf32>
    %68 = vector.broadcast %67 : vector<16x1xf32> to vector<16x32xf32>
    %69 = arith.subf %63, %68 : vector<16x32xf32>
    %70 = arith.mulf %69, %69 : vector<16x32xf32>
    %cst_43 = arith.constant dense<0.000000e+00> : vector<16xf32>
    %71 = vector.multi_reduction <add>, %70, %cst_43 [1] : vector<16x32xf32> to vector<16xf32>
    %72 = vector.shape_cast %71 : vector<16xf32> to vector<16x1xf32>
    %cst_44 = arith.constant 3.200000e+01 : f32
    %73 = vector.broadcast %cst_44 : f32 to vector<16x1xf32>
    %74 = arith.divf %72, %73 : vector<16x1xf32>
    %75 = vector.broadcast %67 : vector<16x1xf32> to vector<16x32xf32>
    %76 = arith.subf %63, %75 : vector<16x32xf32>
    %cst_45 = arith.constant 9.99999974E-6 : f32
    %77 = vector.broadcast %cst_45 : f32 to vector<16x1xf32>
    %78 = arith.addf %74, %77 : vector<16x1xf32>
    %79 = math.rsqrt %78 : vector<16x1xf32>
    %80 = vector.broadcast %79 : vector<16x1xf32> to vector<16x32xf32>
    %81 = arith.mulf %76, %80 : vector<16x32xf32>
    %c0_46 = arith.constant 0 : index
    %c0_47 = arith.constant 0 : index
    %82 = vector.load %arg12[%c0_46, %c0_47] : memref<1x32xf32, #tpu.memory_space<vmem>>, vector<1x32xf32>
    %83 = vector.broadcast %82 : vector<1x32xf32> to vector<16x32xf32>
    %84 = arith.mulf %81, %83 : vector<16x32xf32>
    %c0_48 = arith.constant 0 : index
    %c0_49 = arith.constant 0 : index
    %85 = vector.load %arg13[%c0_48, %c0_49] : memref<1x32xf32, #tpu.memory_space<vmem>>, vector<1x32xf32>
    %86 = vector.broadcast %85 : vector<1x32xf32> to vector<16x32xf32>
    %87 = arith.addf %84, %86 : vector<16x32xf32>
    %c0_50 = arith.constant 0 : index
    %c0_51 = arith.constant 0 : index
    %88 = vector.load %arg14[%c0_50, %c0_51] : memref<32x64xf32, #tpu.memory_space<vmem>>, vector<32x64xf32>
    %cst_52 = arith.constant dense<0.000000e+00> : vector<16x64xf32>
    %89 = tpu.matmul %87, %88, %cst_52 {dimension_numbers = #tpu.dot_dimension_numbers<[1], [0], [0], [1], [0, 0, 1, 1], [], []>} : vector<16x32xf32>, vector<32x64xf32>, vector<16x64xf32> -> vector<16x64xf32>
    %c0_53 = arith.constant 0 : index
    %c0_54 = arith.constant 0 : index
    %90 = vector.load %arg15[%c0_53, %c0_54] : memref<1x64xf32, #tpu.memory_space<vmem>>, vector<1x64xf32>
    %91 = vector.broadcast %90 : vector<1x64xf32> to vector<16x64xf32>
    %92 = arith.addf %89, %91 : vector<16x64xf32>
    %cst_55 = arith.constant 5.000000e-01 : f32
    %93 = vector.broadcast %cst_55 : f32 to vector<16x64xf32>
    %94 = arith.mulf %93, %92 : vector<16x64xf32>
    %cst_56 = arith.constant 0.707106769 : f32
    %95 = vector.broadcast %cst_56 : f32 to vector<16x64xf32>
    %96 = arith.mulf %92, %95 : vector<16x64xf32>
    %97 = math.erf %96 : vector<16x64xf32>
    %cst_57 = arith.constant 1.000000e+00 : f32
    %98 = vector.broadcast %cst_57 : f32 to vector<16x64xf32>
    %99 = arith.addf %98, %97 : vector<16x64xf32>
    %100 = arith.mulf %94, %99 : vector<16x64xf32>
    %c0_58 = arith.constant 0 : index
    %c0_59 = arith.constant 0 : index
    %101 = vector.load %arg16[%c0_58, %c0_59] : memref<64x32xf32, #tpu.memory_space<vmem>>, vector<64x32xf32>
    %cst_60 = arith.constant dense<0.000000e+00> : vector<16x32xf32>
    %102 = tpu.matmul %100, %101, %cst_60 {dimension_numbers = #tpu.dot_dimension_numbers<[1], [0], [0], [1], [0, 0, 1, 1], [], []>} : vector<16x64xf32>, vector<64x32xf32>, vector<16x32xf32> -> vector<16x32xf32>
    %c0_61 = arith.constant 0 : index
    %c0_62 = arith.constant 0 : index
    %103 = vector.load %arg17[%c0_61, %c0_62] : memref<1x32xf32, #tpu.memory_space<vmem>>, vector<1x32xf32>
    %104 = vector.broadcast %103 : vector<1x32xf32> to vector<16x32xf32>
    %105 = arith.addf %102, %104 : vector<16x32xf32>
    %106 = arith.addf %63, %105 : vector<16x32xf32>
    %c0_63 = arith.constant 0 : index
    %c0_64 = arith.constant 0 : index
    %107 = vector.load %arg18[%c0_63, %c0_64] : memref<16x32xf32, #tpu.memory_space<vmem>>, vector<16x32xf32>
    tpu.vector_store %arg18[%c0_63, %c0_64], %106 {strides = array<i32>} : memref<16x32xf32, #tpu.memory_space<vmem>>, vector<16x32xf32>,
    return
  }
  func.func @transform_0(%arg0: i32) -> (i32, i32) {
    %c0_i32 = arith.constant 0 : i32
    %c0_i32_0 = arith.constant 0 : i32
    return %arg0, %c0_i32 : i32, i32
  }
  func.func @transform_1(%arg0: i32) -> (i32, i32) {
    %c0_i32 = arith.constant 0 : i32
    %c0_i32_0 = arith.constant 0 : i32
    %c0_i32_1 = arith.constant 0 : i32
    return %c0_i32, %c0_i32_0 : i32, i32
  }
  func.func @transform_2(%arg0: i32) -> (i32, i32) {
    %c0_i32 = arith.constant 0 : i32
    %c0_i32_0 = arith.constant 0 : i32
    %c0_i32_1 = arith.constant 0 : i32
    return %c0_i32, %c0_i32_0 : i32, i32
  }
  func.func @transform_3(%arg0: i32) -> (i32, i32, i32) {
    %c0_i32 = arith.constant 0 : i32
    %c0_i32_0 = arith.constant 0 : i32
    %c0_i32_1 = arith.constant 0 : i32
    %c0_i32_2 = arith.constant 0 : i32
    return %c0_i32, %c0_i32_0, %c0_i32_1 : i32, i32, i32
  }
  func.func @transform_4(%arg0: i32) -> (i32, i32, i32) {
    %c0_i32 = arith.constant 0 : i32
    %c0_i32_0 = arith.constant 0 : i32
    %c0_i32_1 = arith.constant 0 : i32
    %c0_i32_2 = arith.constant 0 : i32
    return %c0_i32, %c0_i32_0, %c0_i32_1 : i32, i32, i32
  }
  func.func @transform_5(%arg0: i32) -> (i32, i32, i32) {
    %c0_i32 = arith.constant 0 : i32
    %c0_i32_0 = arith.constant 0 : i32
    %c0_i32_1 = arith.constant 0 : i32
    %c0_i32_2 = arith.constant 0 : i32
    return %c0_i32, %c0_i32_0, %c0_i32_1 : i32, i32, i32
  }
  func.func @transform_6(%arg0: i32) -> (i32, i32, i32) {
    %c0_i32 = arith.constant 0 : i32
    %c0_i32_0 = arith.constant 0 : i32
    %c0_i32_1 = arith.constant 0 : i32
    %c0_i32_2 = arith.constant 0 : i32
    return %c0_i32, %c0_i32_0, %c0_i32_1 : i32, i32, i32
  }
  func.func @transform_7(%arg0: i32) -> (i32, i32, i32) {
    %c0_i32 = arith.constant 0 : i32
    %c0_i32_0 = arith.constant 0 : i32
    %c0_i32_1 = arith.constant 0 : i32
    %c0_i32_2 = arith.constant 0 : i32
    return %c0_i32, %c0_i32_0, %c0_i32_1 : i32, i32, i32
  }
  func.func @transform_8(%arg0: i32) -> (i32, i32, i32) {
    %c0_i32 = arith.constant 0 : i32
    %c0_i32_0 = arith.constant 0 : i32
    %c0_i32_1 = arith.constant 0 : i32
    %c0_i32_2 = arith.constant 0 : i32
    return %c0_i32, %c0_i32_0, %c0_i32_1 : i32, i32, i32
  }
  func.func @transform_9(%arg0: i32) -> (i32, i32, i32) {
    %c0_i32 = arith.constant 0 : i32
    %c0_i32_0 = arith.constant 0 : i32
    %c0_i32_1 = arith.constant 0 : i32
    %c0_i32_2 = arith.constant 0 : i32
    return %c0_i32, %c0_i32_0, %c0_i32_1 : i32, i32, i32
  }
  func.func @transform_10(%arg0: i32) -> (i32, i32) {
    %c0_i32 = arith.constant 0 : i32
    %c0_i32_0 = arith.constant 0 : i32
    %c0_i32_1 = arith.constant 0 : i32
    return %c0_i32, %c0_i32_0 : i32, i32
  }
  func.func @transform_11(%arg0: i32) -> (i32, i32) {
    %c0_i32 = arith.constant 0 : i32
    %c0_i32_0 = arith.constant 0 : i32
    %c0_i32_1 = arith.constant 0 : i32
    return %c0_i32, %c0_i32_0 : i32, i32
  }
  func.func @transform_12(%arg0: i32) -> (i32, i32) {
    %c0_i32 = arith.constant 0 : i32
    %c0_i32_0 = arith.constant 0 : i32
    %c0_i32_1 = arith.constant 0 : i32
    return %c0_i32, %c0_i32_0 : i32, i32
  }
  func.func @transform_13(%arg0: i32) -> (i32, i32) {
    %c0_i32 = arith.constant 0 : i32
    %c0_i32_0 = arith.constant 0 : i32
    %c0_i32_1 = arith.constant 0 : i32
    return %c0_i32, %c0_i32_0 : i32, i32
  }
  func.func @transform_14(%arg0: i32) -> (i32, i32) {
    %c0_i32 = arith.constant 0 : i32
    %c0_i32_0 = arith.constant 0 : i32
    %c0_i32_1 = arith.constant 0 : i32
    return %c0_i32, %c0_i32_0 : i32, i32
  }
  func.func @transform_15(%arg0: i32) -> (i32, i32) {
    %c0_i32 = arith.constant 0 : i32
    %c0_i32_0 = arith.constant 0 : i32
    %c0_i32_1 = arith.constant 0 : i32
    return %c0_i32, %c0_i32_0 : i32, i32
  }
  func.func @transform_16(%arg0: i32) -> (i32, i32) {
    %c0_i32 = arith.constant 0 : i32
    %c0_i32_0 = arith.constant 0 : i32
    %c0_i32_1 = arith.constant 0 : i32
    return %c0_i32, %c0_i32_0 : i32, i32
  }
  func.func @transform_17(%arg0: i32) -> (i32, i32) {
    %c0_i32 = arith.constant 0 : i32
    %c0_i32_0 = arith.constant 0 : i32
    return %arg0, %c0_i32 : i32, i32
  }
}

</mosaic_0001>

<bundles_post_ra>
// kernel: tpu_custom_call.1
= control target key start
LH: loop header
LB: loop body
LE: loop exit
PB: predicated region body
PF: predicated region fallthrough
CT: control target
= control target key end

     0   :  { %s6053_s0 = inlined_call_operand.vmem [shape: f32[16,32], index: 0, kind: input, shape index: {}]   ;;  %s6054_s1 = inlined_call_operand.vmem [shape: f32[1,32], index: 1, kind: input, shape index: {}]   ;;  %s6055_s2 = inlined_call_operand.vmem [shape: f32[1,32], index: 2, kind: input, shape index: {}]   ;;  %s6056_s3 = inlined_call_operand.vmem [shape: f32[8,32,8], index: 3, kind: input, shape index: {}]   ;;  %s6057_s4 = inlined_call_operand.vmem [shape: f32[8,1,8], index: 4, kind: input, shape index: {}]   ;;  %s6058_s5 = inlined_call_operand.vmem [shape: f32[8,32,8], index: 5, kind: input, shape index: {}]   ;;  %s6059_s6 = inlined_call_operand.vmem [shape: f32[8,1,8], index: 6, kind: input, shape index: {}]   ;;  %s6060_s7 = inlined_call_operand.vmem [shape: f32[8,32,8], index: 7, kind: input, shape index: {}]   ;;  %s6061_s8 = inlined_call_operand.vmem [shape: f32[8,1,8], index: 8, kind: input, shape index: {}]   ;;  %s6062_s9 = inlined_call_operand.vmem [shape: f32[8,8,32], index: 9, kind: input, shape index: {}]   ;;  %s6063_s10 = inlined_call_operand.vmem [shape: f32[1,32], index: 10, kind: input, shape index: {}]   ;;  %s6064_s11 = inlined_call_operand.vmem [shape: f32[1,32], index: 11, kind: input, shape index: {}]   ;;  %s6065_s12 = inlined_call_operand.vmem [shape: f32[1,32], index: 12, kind: input, shape index: {}]   ;;  %s6066_s13 = inlined_call_operand.vmem [shape: f32[32,64], index: 13, kind: input, shape index: {}]   ;;  %s6067_s14 = inlined_call_operand.vmem [shape: f32[1,64], index: 14, kind: input, shape index: {}]   ;;  %s6068_s15 = inlined_call_operand.vmem [shape: f32[64,32], index: 15, kind: input, shape index: {}]   ;;  %s6069_s16 = inlined_call_operand.vmem [shape: f32[1,32], index: 16, kind: input, shape index: {}]   ;;  %s6070_s17 = inlined_call_operand.hbm [shape: f32[16,32], index: 17, kind: output, shape index: {}]  }
   0x1   :  { %6072 = sst [smem:[#allocation5_spill]] %s6053_s0 }
   0x2   :  { %6073 = sst [smem:[#allocation6_spill]] %s6054_s1 }
   0x3   :  { %s6074_s26 = sld [smem:[#allocation5_spill]]  ;;  %vm59_vm0 = vcmask 261120  }
   0x9   :  { %v57_v0 = vld [vmem:[%s6074_s26] sm:$0xff]  ;;  %v58_v1 = vld [vmem:[%s6074_s26 + $0x8] sm:$0xff] }
   0xa   :  { %22 = vsyncpa [#allocation3], 0  ;;  %v60_v2 = vsel %vm59_vm0, %v57_v0, 0.0  ;;  %v63_v3 = vsel %vm59_vm0, %v58_v1, 0.0  ;;  %v105_v14 = vld [vmem:[%s6056_s3] sm:$0xff]  ;;  %v106_v15 = vld [vmem:[%s6056_s3 + $0x8] sm:$0xff] }
   0xb   :  { %61 = vadd.xlane.f32.xlu0 %v60_v2  ;;  %v109_v16 = vld [vmem:[%s6056_s3 + $0x20] sm:$0xff]  ;;  %v4906_v17 = vpack.c.bf16 %v106_v15, %v105_v14  ;;  %v110_v18 = vld [vmem:[%s6056_s3 + $0x28] sm:$0xff]  ;;  %v5149_v19 = vmov 0.0|0.0   ;;  %v107_v21 = vld [vmem:[%s6056_s3 + $0x10] sm:$0xff]  ;;  %vm5150_vm1 = vmmov 0   ;;  %v5151_v27 = vmov 0.0  }
   0xc   :  { %4905 = vmatprep.subr.bf16.mxu0 %v5149_v19  ;;  %4911 = vmatprep.subr.bf16.mxu1 %v5149_v19  ;;  %v4912_v20 = vpack.c.bf16 %v110_v18, %v109_v16  ;;  %v108_v22 = vld [vmem:[%s6056_s3 + $0x18] sm:$0xff]  ;;  %v111_v23 = vld [vmem:[%s6056_s3 + $0x30] sm:$0xff]  ;;  %s6075_s19 = sld [smem:[#allocation6_spill]]  ;;  %v113_v36 = vld [vmem:[%s6056_s3 + $0x40] sm:$0xff]  ;;  %vm2055_vm2 = vcmask 64512   ;;  %vm4114_vm3 = vcmask 523264  }
   0xd   :  { %4907 = vmatpush3.bf16.msra.mxu0 %v4906_v17  ;;  %v4909_v24 = vpack.c.bf16 %v108_v22, %v107_v21  ;;  %v112_v25 = vld [vmem:[%s6056_s3 + $0x38] sm:$0xff]  ;;  %4499 = vmatprep.mubr.msk.f32.mxu0 %vm5150_vm1, %v5151_v27  ;;  %v114_v38 = vld [vmem:[%s6056_s3 + $0x48] sm:$0xff]  ;;  %v117_v39 = vld [vmem:[%s6056_s3 + $0x60] sm:$0xff]  ;;  %s5152_s28 = smov [#allocation2]  }
   0xe   :  { %4913 = vmatpush3.bf16.msra.mxu1 %v4912_v20  ;;  %4908 = vmatprep.subr.bf16.mxu0 %v5149_v19  ;;  %v4915_v26 = vpack.c.bf16 %v112_v25, %v111_v23  ;;  %v118_v40 = vld [vmem:[%s6056_s3 + $0x68] sm:$0xff]  ;;  %v4217_v41 = vld [vmem:[%s6055_s2] ss:$0 sm:$0xff]  ;;  %v4918_v43 = vpack.c.bf16 %v114_v38, %v113_v36  ;;  %v115_v45 = vld [vmem:[%s6056_s3 + $0x50] sm:$0xff]  ;;  %s4205_s29 = sshll.u32 %s5152_s28, 4  ;;  %s4206_s29 = int_to_ptr.vmem [resolvable:$true] %s4205_s29 }
   0xf   :  { %64 = vadd.xlane.f32.xlu0 %v63_v3  ;;  %4914 = vmatprep.subr.bf16.mxu1 %v5149_v19  ;;  %v4924_v44 = vpack.c.bf16 %v118_v40, %v117_v39  ;;  %v116_v47 = vld [vmem:[%s6056_s3 + $0x58] sm:$0xff]  ;;  %v119_v48 = vld [vmem:[%s6056_s3 + $0x70] sm:$0xff]  ;;  %v121_v52 = vld [vmem:[%s6056_s3 + $0x80] sm:$0xff]  ;;  %s5125_s0 = scalar_lea.vmem %s4206_s29, 256  ;;  %p5130_p1 = scmp.lt.s32.totalorder %s4206_s29, %s4206_s29 }
  0x10   :  { %4510 = vmatprep.mubr.msk.f32.mxu1 %vm5150_vm1, %v5151_v27  ;;  %v120_v49 = vld [vmem:[%s6056_s3 + $0x78] sm:$0xff]  ;;  %v4921_v50 = vpack.c.bf16 %v116_v47, %v115_v45  ;;  %v122_v53 = vld [vmem:[%s6056_s3 + $0x88] sm:$0xff]  ;;  %v125_v54 = vld [vmem:[%s6056_s3 + $0xa0] sm:$0xff]  ;;  %p5126_p0 = scmp.ne.s32.totalorder %s4206_s29, %s5125_s0  ;;  %p5131_p2 = scmp.lt.s32.totalorder %s5125_s0, %s5125_s0 }
  0x11   :  { %4910 = vmatpush3.bf16.msra.mxu0 %v4909_v24  ;;  %v4927_v51 = vpack.c.bf16 %v120_v49, %v119_v48  ;;  %v126_v55 = vld [vmem:[%s6056_s3 + $0xa8] sm:$0xff]  ;;  %v4930_v57 = vpack.c.bf16 %v122_v53, %v121_v52  ;;  %v123_v59 = vld [vmem:[%s6056_s3 + $0x90] sm:$0xff]  ;;  %v124_v61 = vld [vmem:[%s6056_s3 + $0x98] sm:$0xff] }
  0x12   :  { %4916 = vmatpush3.bf16.msra.mxu1 %v4915_v26  ;;  %4917 = vmatprep.subr.bf16.mxu0 %v5149_v19  ;;  %v4216_v35 = vld [vmem:[%s6075_s19] ss:$0 sm:$0xff]  ;;  %v4936_v58 = vpack.c.bf16 %v126_v55, %v125_v54  ;;  %v127_v62 = vld [vmem:[%s6056_s3 + $0xb0] sm:$0xff]  ;;  %v128_v63 = vld [vmem:[%s6056_s3 + $0xb8] sm:$0xff]  ;;  %p5132_p3 = por %p5131_p2, %p5130_p1 }
  0x13   :  { %4923 = vmatprep.subr.bf16.mxu1 %v5149_v19  ;;  %v129_v2 = vld [vmem:[%s6056_s3 + $0xc0] sm:$0xff]  ;;  %v760_v17 = vld [vmem:[%s6058_s5 + $0x8] sm:$0xff]  ;;  %v761_v23 = vld [vmem:[%s6058_s5 + $0x10] sm:$0xff] }
  0x14   :  { %v759_v16 = vld [vmem:[%s6058_s5] sm:$0xff]  ;;  %v764_v20 = vld [vmem:[%s6058_s5 + $0x28] sm:$0xff]  ;;  %v762_v24 = vld [vmem:[%s6058_s5 + $0x18] sm:$0xff]  ;;  %p5133_p4 = pnand %p5132_p3, %p5126_p0 }
  0x15   :  { %v763_v18 = vld [vmem:[%s6058_s5 + $0x20] sm:$0xff]  ;;  %v4954_v21 = vpack.c.bf16 %v760_v17, %v759_v16  ;;  %v765_v25 = vld [vmem:[%s6058_s5 + $0x30] sm:$0xff]  ;;  %v766_v26 = vld [vmem:[%s6058_s5 + $0x38] sm:$0xff] }
  0x16   :  { %v4960_v22 = vpack.c.bf16 %v764_v20, %v763_v18  ;;  %v769_v36 = vld [vmem:[%s6058_s5 + $0x50] sm:$0xff]  ;;  %v774_v39 = vld [vmem:[%s6058_s5 + $0x78] sm:$0xff]  ;;  %v780_v45 = vld [vmem:[%s6058_s5 + $0xa8] sm:$0xff] }
  0x17   :  { %v773_v38 = vld [vmem:[%s6058_s5 + $0x70] sm:$0xff]  ;;  %v782_v52 = vld [vmem:[%s6058_s5 + $0xb8] sm:$0xff]  ;;  %v783_v55 = vld [vmem:[%s6058_s5 + $0xc0] sm:$0xff] }
  0x18   :  { %v777_v49 = vld [vmem:[%s6058_s5 + $0x90] sm:$0xff]  ;;  %v1415_v16 = vld [vmem:[%s6060_s7 + $0x40] sm:$0xff]  ;;  %v1416_v17 = vld [vmem:[%s6060_s7 + $0x48] sm:$0xff] }
  0x19   :  { %v1419_v18 = vld [vmem:[%s6060_s7 + $0x60] sm:$0xff]  ;;  %v1420_v20 = vld [vmem:[%s6060_s7 + $0x68] sm:$0xff] }
  0x98   :  { %v62_v4 = vpop.xlane.xlu0 %61 }
  0x99   :  { %v67_v5 = vmul.f32 0.03125, %v62_v4  ;;  %v130_v4 = vld [vmem:[%s6056_s3 + $0xc8] sm:$0xff] }
  0x9b   :  { %v69_v6 = vsub.f32 %v57_v0, %v67_v5  ;;  %v4933_v0 = vpack.c.bf16 %v124_v61, %v123_v59  ;;  %v133_v5 = vld [vmem:[%s6056_s3 + $0xe0] sm:$0xff]  ;;  %v785_v61 = vld [vmem:[%s6058_s5 + $0xd0] sm:$0xff] }
  0x9c   :  { %v65_v7 = vpop.xlane.xlu0 %64 }
  0x9d   :  { %v68_v8 = vmul.f32 0.03125, %v65_v7  ;;  %v71_v9 = vmul.f32 %v69_v6, %v69_v6  ;;  %v4942_v7 = vpack.c.bf16 %v130_v4, %v129_v2  ;;  %v1408_v4 = vld [vmem:[%s6060_s7 + $0x8] sm:$0xff] }
  0x9f   :  { %v5253_v10 = vsub.f32 %v58_v1, %v68_v8  ;;  %v73_v11 = vsel %vm59_vm0, %v71_v9, 0.0  ;;  %v4939_v1 = vpack.c.bf16 %v128_v63, %v127_v62  ;;  %v131_v9 = vld [vmem:[%s6056_s3 + $0xd0] sm:$0xff]  ;;  %v786_v62 = vld [vmem:[%s6058_s5 + $0xd8] sm:$0xff] }
  0xa0   :  { %74 = vadd.xlane.f32.xlu1 %v73_v11  ;;  %v132_v11 = vld [vmem:[%s6056_s3 + $0xd8] sm:$0xff]  ;;  %v789_v63 = vld [vmem:[%s6058_s5 + $0xf0] sm:$0xff] }
  0xa1   :  { %v72_v12 = vmul.f32 %v5253_v10, %v5253_v10  ;;  %v4945_v14 = vpack.c.bf16 %v132_v11, %v131_v9  ;;  %v1409_v9 = vld [vmem:[%s6060_s7 + $0x10] sm:$0xff]  ;;  %v1410_v11 = vld [vmem:[%s6060_s7 + $0x18] sm:$0xff] }
  0xa3   :  { %v76_v13 = vsel %vm59_vm0, %v72_v12, 0.0  ;;  %v135_v12 = vld [vmem:[%s6056_s3 + $0xf0] sm:$0xff] }
  0xa4   :  { %77 = vadd.xlane.f32.xlu1 %v76_v13  ;;  %v136_v13 = vld [vmem:[%s6056_s3 + $0xf8] sm:$0xff] }
  0xa5   :  { %v4951_v15 = vpack.c.bf16 %v136_v13, %v135_v12  ;;  %v1413_v12 = vld [vmem:[%s6060_s7 + $0x30] sm:$0xff]  ;;  %v1414_v13 = vld [vmem:[%s6060_s7 + $0x38] sm:$0xff] }
 0x12d   :  { %v75_v28 = vpop.xlane.xlu1 %74 }
 0x12e   :  { %v79_v29 = vmul.f32 0.03125, %v75_v28  ;;  %v4957_v28 = vpack.c.bf16 %v762_v24, %v761_v23  ;;  %v1417_v23 = vld [vmem:[%s6060_s7 + $0x50] sm:$0xff]  ;;  %v1418_v24 = vld [vmem:[%s6060_s7 + $0x58] sm:$0xff] }
 0x130   :  { %v81_v30 = vadd.f32 1e-05, %v79_v29  ;;  %v4963_v29 = vpack.c.bf16 %v766_v26, %v765_v25  ;;  %v1421_v25 = vld [vmem:[%s6060_s7 + $0x70] sm:$0xff]  ;;  %v1422_v26 = vld [vmem:[%s6060_s7 + $0x78] sm:$0xff] }
 0x131   :  { %v78_v31 = vpop.xlane.xlu1 %77 }
 0x132   :  { %5079 = vrsqrt.f32 %v81_v30  ;;  %v80_v32 = vmul.f32 0.03125, %v78_v31  ;;  %v767_v30 = vld [vmem:[%s6058_s5 + $0x40] sm:$0xff]  ;;  %v768_v31 = vld [vmem:[%s6058_s5 + $0x48] sm:$0xff] }
 0x134   :  { %v82_v33 = vadd.f32 1e-05, %v80_v32  ;;  %v771_v32 = vld [vmem:[%s6058_s5 + $0x60] sm:$0xff] }
 0x136   :  { %5081 = vrsqrt.f32 %v82_v33  ;;  %v772_v33 = vld [vmem:[%s6058_s5 + $0x68] sm:$0xff] }
 0x13c   :  { %v5080_v34 = vpop.eup %5079 }
 0x13d   :  { %v85_v37 = vmul.f32 %v5080_v34, %v69_v6  ;;  %v134_v6 = vld [vmem:[%s6056_s3 + $0xe8] sm:$0xff]  ;;  %v4966_v34 = vpack.c.bf16 %v768_v31, %v767_v30  ;;  %v1423_v30 = vld [vmem:[%s6060_s7 + $0x80] sm:$0xff] }
 0x13e   :  { %v4948_v8 = vpack.c.bf16 %v134_v6, %v133_v5  ;;  %v1411_v5 = vld [vmem:[%s6060_s7 + $0x20] sm:$0xff]  ;;  %v1412_v6 = vld [vmem:[%s6060_s7 + $0x28] sm:$0xff] }
 0x13f   :  { %v94_v42 = vmul.f32 %v4216_v35, %v85_v37  ;;  %v770_v37 = vld [vmem:[%s6058_s5 + $0x58] sm:$0xff]  ;;  %v1424_v31 = vld [vmem:[%s6060_s7 + $0x88] sm:$0xff] }
 0x140   :  { %v5082_v56 = vpop.eup %5081  ;;  %v4969_v40 = vpack.c.bf16 %v770_v37, %v769_v36  ;;  %v1425_v36 = vld [vmem:[%s6060_s7 + $0x90] sm:$0xff]  ;;  %v1426_v37 = vld [vmem:[%s6060_s7 + $0x98] sm:$0xff] }
 0x141   :  { %v5314_v46 = vadd.f32 %v4217_v41, %v94_v42  ;;  %v86_v60 = vmul.f32 %v5082_v56, %v5253_v10  ;;  %v775_v42 = vld [vmem:[%s6058_s5 + $0x80] sm:$0xff]  ;;  %v784_v56 = vld [vmem:[%s6058_s5 + $0xc8] sm:$0xff] }
 0x142   :  { %v4990_v59 = vpack.c.bf16 %v784_v56, %v783_v55 }
 0x143   :  { %4500 = vmatmul.mubr.msk.f32.vlgmr.msra.gmra.mrb[0].mxu0 %vm59_vm0, %v5314_v46  ;;  %4511 = vmatmul.mubr.msk.f32.vlgmr.msra.gmra.mrb[0].mxu1 %vm59_vm0, %v5314_v46  ;;  %v95_v3 = vmul.f32 %v4216_v35, %v86_v60  ;;  %v4972_v35 = vpack.c.bf16 %v772_v33, %v771_v32  ;;  %v1427_v32 = vld [vmem:[%s6060_s7 + $0xa0] sm:$0xff]  ;;  %v1428_v33 = vld [vmem:[%s6060_s7 + $0xa8] sm:$0xff] }
 0x144   :  { %4919 = vmatpush3.bf16.msra.mxu0 %v4918_v43  ;;  %4925 = vmatpush3.bf16.msra.mxu1 %v4924_v44  ;;  %v776_v43 = vld [vmem:[%s6058_s5 + $0x88] sm:$0xff]  ;;  %v779_v44 = vld [vmem:[%s6058_s5 + $0xa0] sm:$0xff] }
 0x145   :  { %4920 = vmatprep.subr.bf16.mxu0 %v5149_v19  ;;  %4926 = vmatprep.subr.bf16.mxu1 %v5149_v19  ;;  %v5387_v10 = vadd.f32 %v4217_v41, %v95_v3  ;;  %v4975_v41 = vpack.c.bf16 %v774_v39, %v773_v38  ;;  %v4978_v47 = vpack.c.bf16 %v776_v43, %v775_v42  ;;  %v1407_v3 = vld [vmem:[%s6060_s7] sm:$0xff]  ;;  %v1429_v38 = vld [vmem:[%s6060_s7 + $0xb0] sm:$0xff]  ;;  %v1430_v39 = vld [vmem:[%s6060_s7 + $0xb8] sm:$0xff] }
 0x146   :  { %4521 = vmatprep.mubr.msk.f32.mxu0 %vm5150_vm1, %v5151_v27  ;;  %4532 = vmatprep.mubr.msk.f32.mxu1 %vm5150_vm1, %v5151_v27  ;;  %v4984_v48 = vpack.c.bf16 %v780_v45, %v779_v44  ;;  %v1431_v42 = vld [vmem:[%s6060_s7 + $0xc0] sm:$0xff]  ;;  %v1432_v43 = vld [vmem:[%s6060_s7 + $0xc8] sm:$0xff] }
 0x147   :  { %v1436_v44 = vld [vmem:[%s6060_s7 + $0xe8] sm:$0xff]  ;;  %v5038_v45 = vpack.c.bf16 %v1432_v43, %v1431_v42  ;;  %v4240_v43 = vld [vmem:[%s6059_s6 + $0x6] ss:$0 sm:$0xff] }
 0x148   :  { %4922 = vmatpush3.bf16.msra.mxu0 %v4921_v50  ;;  %4928 = vmatpush3.bf16.msra.mxu1 %v4927_v51  ;;  %v778_v50 = vld [vmem:[%s6058_s5 + $0x98] sm:$0xff]  ;;  %v781_v51 = vld [vmem:[%s6058_s5 + $0xb0] sm:$0xff] }
 0x149   :  { %4929 = vmatprep.subr.bf16.mxu0 %v5149_v19  ;;  %4935 = vmatprep.subr.bf16.mxu1 %v5149_v19  ;;  %v4981_v53 = vpack.c.bf16 %v778_v50, %v777_v49  ;;  %v4987_v54 = vpack.c.bf16 %v782_v52, %v781_v51  ;;  %v1434_v49 = vld [vmem:[%s6060_s7 + $0xd8] sm:$0xff]  ;;  %v1437_v50 = vld [vmem:[%s6060_s7 + $0xf0] sm:$0xff] }
 0x14a   :  { %v1438_v51 = vld [vmem:[%s6060_s7 + $0xf8] sm:$0xff] }
 0x14b   :  { %4522 = vmatmul.mubr.msk.f32.vlgmr.msra.gmra.mrb[2].mxu0 %vm59_vm0, %v5314_v46  ;;  %4533 = vmatmul.mubr.msk.f32.vlgmr.msra.gmra.mrb[2].mxu1 %vm59_vm0, %v5314_v46 }
 0x14c   :  { %4931 = vmatpush3.bf16.msra.mxu0 %v4930_v57  ;;  %4937 = vmatpush3.bf16.msra.mxu1 %v4936_v58  ;;  %v787_v57 = vld [vmem:[%s6058_s5 + $0xe0] sm:$0xff]  ;;  %v788_v58 = vld [vmem:[%s6058_s5 + $0xe8] sm:$0xff] }
 0x14d   :  { %4932 = vmatprep.subr.bf16.mxu0 %v5149_v19  ;;  %4938 = vmatprep.subr.bf16.mxu1 %v5149_v19  ;;  %v4996_v60 = vpack.c.bf16 %v788_v58, %v787_v57 }
 0x14e   :  { %4543 = vmatprep.mubr.msk.f32.mxu0 %vm5150_vm1, %v5151_v27  ;;  %4554 = vmatprep.mubr.msk.f32.mxu1 %vm5150_vm1, %v5151_v27 }
 0x150   :  { %4934 = vmatpush3.bf16.msra.mxu0 %v4933_v0  ;;  %4940 = vmatpush3.bf16.msra.mxu1 %v4939_v1  ;;  %v790_v0 = vld [vmem:[%s6058_s5 + $0xf8] sm:$0xff]  ;;  %v4993_v1 = vpack.c.bf16 %v786_v62, %v785_v61 }
 0x151   :  { %4941 = vmatprep.subr.bf16.mxu0 %v5149_v19  ;;  %4947 = vmatprep.subr.bf16.mxu1 %v5149_v19  ;;  %v4999_v2 = vpack.c.bf16 %v790_v0, %v789_v63 }
 0x153   :  { %4544 = vmatmul.mubr.msk.f32.vlgmr.msra.gmra.mrb[4].mxu0 %vm59_vm0, %v5387_v10  ;;  %4555 = vmatmul.mubr.msk.f32.vlgmr.msra.gmra.mrb[4].mxu1 %vm59_vm0, %v5387_v10 }
 0x154   :  { %4943 = vmatpush3.bf16.msra.mxu0 %v4942_v7  ;;  %4949 = vmatpush3.bf16.msra.mxu1 %v4948_v8  ;;  %v5002_v7 = vpack.c.bf16 %v1408_v4, %v1407_v3  ;;  %v5008_v8 = vpack.c.bf16 %v1412_v6, %v1411_v5  ;;  %v4234_v4 = vld [vmem:[%s6059_s6] ss:$0 sm:$0xff] }
 0x155   :  { %4944 = vmatprep.subr.bf16.mxu0 %v5149_v19  ;;  %4950 = vmatprep.subr.bf16.mxu1 %v5149_v19 }
 0x156   :  { %4565 = vmatprep.mubr.msk.f32.mxu0 %vm5150_vm1, %v5151_v27  ;;  %4576 = vmatprep.mubr.msk.f32.mxu1 %vm5150_vm1, %v5151_v27 }
 0x158   :  { %4946 = vmatpush3.bf16.msra.mxu0 %v4945_v14  ;;  %4952 = vmatpush3.bf16.msra.mxu1 %v4951_v15  ;;  %v5005_v14 = vpack.c.bf16 %v1410_v11, %v1409_v9  ;;  %v5011_v15 = vpack.c.bf16 %v1414_v13, %v1413_v12  ;;  %v4235_v12 = vld [vmem:[%s6059_s6 + $0x1] ss:$0 sm:$0xff] }
 0x159   :  { %4953 = vmatprep.subr.bf16.mxu0 %v5149_v19  ;;  %4959 = vmatprep.subr.bf16.mxu1 %v5149_v19 }
 0x15b   :  { %4566 = vmatmul.mubr.msk.f32.vlgmr.msra.gmra.mrb[6].mxu0 %vm59_vm0, %v5387_v10  ;;  %4577 = vmatmul.mubr.msk.f32.vlgmr.msra.gmra.mrb[6].mxu1 %vm59_vm0, %v5387_v10 }
 0x15c   :  { %4955 = vmatpush3.bf16.msra.mxu0 %v4954_v21  ;;  %4961 = vmatpush3.bf16.msra.mxu1 %v4960_v22  ;;  %v5014_v21 = vpack.c.bf16 %v1416_v17, %v1415_v16  ;;  %v5020_v22 = vpack.c.bf16 %v1420_v20, %v1419_v18  ;;  %v4236_v16 = vld [vmem:[%s6059_s6 + $0x2] ss:$0 sm:$0xff]  ;;  %v4237_v17 = vld [vmem:[%s6059_s6 + $0x3] ss:$0 sm:$0xff] }
 0x15d   :  { %4956 = vmatprep.subr.bf16.mxu0 %v5149_v19  ;;  %4962 = vmatprep.subr.bf16.mxu1 %v5149_v19 }
 0x15e   :  { %4587 = vmatprep.mubr.msk.f32.mxu0 %vm5150_vm1, %v5151_v27  ;;  %4598 = vmatprep.mubr.msk.f32.mxu1 %vm5150_vm1, %v5151_v27 }
 0x160   :  { %4958 = vmatpush3.bf16.msra.mxu0 %v4957_v28  ;;  %4964 = vmatpush3.bf16.msra.mxu1 %v4963_v29  ;;  %v5017_v28 = vpack.c.bf16 %v1418_v24, %v1417_v23  ;;  %v5023_v29 = vpack.c.bf16 %v1422_v26, %v1421_v25  ;;  %v4221_v23 = vld [vmem:[%s6057_s4 + $0x3] ss:$0 sm:$0xff] }
 0x161   :  { %4965 = vmatprep.subr.bf16.mxu0 %v5149_v19  ;;  %4971 = vmatprep.subr.bf16.mxu1 %v5149_v19 }
 0x163   :  { %4588 = vmatmul.mubr.msk.f32.vlgmr.msra.gmra.mrb[8].mxu0 %vm59_vm0, %v5314_v46  ;;  %4599 = vmatmul.mubr.msk.f32.vlgmr.msra.gmra.mrb[8].mxu1 %vm59_vm0, %v5314_v46 }
 0x164   :  { %4967 = vmatpush3.bf16.msra.mxu0 %v4966_v34  ;;  %4973 = vmatpush3.bf16.msra.mxu1 %v4972_v35  ;;  %v5026_v34 = vpack.c.bf16 %v1424_v31, %v1423_v30  ;;  %v5032_v35 = vpack.c.bf16 %v1428_v33, %v1427_v32  ;;  %v4238_v31 = vld [vmem:[%s6059_s6 + $0x4] ss:$0 sm:$0xff]  ;;  %v4239_v32 = vld [vmem:[%s6059_s6 + $0x5] ss:$0 sm:$0xff] }
 0x165   :  { %4968 = vmatprep.subr.bf16.mxu0 %v5149_v19  ;;  %4974 = vmatprep.subr.bf16.mxu1 %v5149_v19 }
 0x166   :  { %4609 = vmatprep.mubr.msk.f32.mxu0 %vm5150_vm1, %v5151_v27  ;;  %4620 = vmatprep.mubr.msk.f32.mxu1 %vm5150_vm1, %v5151_v27 }
 0x168   :  { %4970 = vmatpush3.bf16.msra.mxu0 %v4969_v40  ;;  %4976 = vmatpush3.bf16.msra.mxu1 %v4975_v41  ;;  %v5029_v40 = vpack.c.bf16 %v1426_v37, %v1425_v36  ;;  %v5035_v41 = vpack.c.bf16 %v1430_v39, %v1429_v38  ;;  %v4223_v36 = vld [vmem:[%s6057_s4 + $0x5] ss:$0 sm:$0xff] }
 0x169   :  { %4977 = vmatprep.subr.bf16.mxu0 %v5149_v19  ;;  %4983 = vmatprep.subr.bf16.mxu1 %v5149_v19 }
 0x16b   :  { %4610 = vmatmul.mubr.msk.f32.vlgmr.msra.gmra.mrb[10].mxu0 %vm59_vm0, %v5314_v46  ;;  %4621 = vmatmul.mubr.msk.f32.vlgmr.msra.gmra.mrb[10].mxu1 %vm59_vm0, %v5314_v46 }
 0x16c   :  { %4979 = vmatpush3.bf16.msra.mxu0 %v4978_v47  ;;  %4985 = vmatpush3.bf16.msra.mxu1 %v4984_v48  ;;  %v1433_v48 = vld [vmem:[%s6060_s7 + $0xd0] sm:$0xff] }
 0x16d   :  { %4980 = vmatprep.subr.bf16.mxu0 %v5149_v19  ;;  %4986 = vmatprep.subr.bf16.mxu1 %v5149_v19  ;;  %v5041_v52 = vpack.c.bf16 %v1434_v49, %v1433_v48  ;;  %v4225_v48 = vld [vmem:[%s6057_s4 + $0x7] ss:$0 sm:$0xff] }
 0x16e   :  { %4631 = vmatprep.mubr.msk.f32.mxu0 %vm5150_vm1, %v5151_v27  ;;  %4642 = vmatprep.mubr.msk.f32.mxu1 %vm5150_vm1, %v5151_v27 }
 0x170   :  { %4982 = vmatpush3.bf16.msra.mxu0 %v4981_v53  ;;  %4988 = vmatpush3.bf16.msra.mxu1 %v4987_v54  ;;  %v5047_v53 = vpack.c.bf16 %v1438_v51, %v1437_v50 }
 0x171   :  { %4989 = vmatprep.subr.bf16.mxu0 %v5149_v19  ;;  %4995 = vmatprep.subr.bf16.mxu1 %v5149_v19 }
 0x173   :  { %4632 = vmatmul.mubr.msk.f32.vlgmr.msra.gmra.mrb[12].mxu0 %vm59_vm0, %v5387_v10  ;;  %4643 = vmatmul.mubr.msk.f32.vlgmr.msra.gmra.mrb[12].mxu1 %vm59_vm0, %v5387_v10 }
 0x174   :  { %4991 = vmatpush3.bf16.msra.mxu0 %v4990_v59  ;;  %4997 = vmatpush3.bf16.msra.mxu1 %v4996_v60 }
 0x175   :  { %4992 = vmatprep.subr.bf16.mxu0 %v5149_v19  ;;  %4998 = vmatprep.subr.bf16.mxu1 %v5149_v19 }
 0x176   :  { %4653 = vmatprep.mubr.msk.f32.mxu0 %vm5150_vm1, %v5151_v27  ;;  %4664 = vmatprep.mubr.msk.f32.mxu1 %vm5150_vm1, %v5151_v27 }
 0x178   :  { %4994 = vmatpush3.bf16.msra.mxu0 %v4993_v1  ;;  %5000 = vmatpush3.bf16.msra.mxu1 %v4999_v2 }
 0x179   :  { %5001 = vmatprep.subr.bf16.mxu0 %v5149_v19  ;;  %5007 = vmatprep.subr.bf16.mxu1 %v5149_v19 }
 0x17b   :  { %4654 = vmatmul.mubr.msk.f32.vlgmr.msra.gmra.mrb[14].mxu0 %vm59_vm0, %v5387_v10  ;;  %4665 = vmatmul.mubr.msk.f32.vlgmr.msra.gmra.mrb[14].mxu1 %vm59_vm0, %v5387_v10 }
 0x17c   :  { %5003 = vmatpush3.bf16.msra.mxu0 %v5002_v7  ;;  %5009 = vmatpush3.bf16.msra.mxu1 %v5008_v8  ;;  %v4218_v7 = vld [vmem:[%s6057_s4] ss:$0 sm:$0xff] }
 0x17d   :  { %5004 = vmatprep.subr.bf16.mxu0 %v5149_v19  ;;  %5010 = vmatprep.subr.bf16.mxu1 %v5149_v19 }
 0x17e   :  { %4675 = vmatprep.mubr.msk.f32.mxu0 %vm5150_vm1, %v5151_v27  ;;  %4686 = vmatprep.mubr.msk.f32.mxu1 %vm5150_vm1, %v5151_v27 }
 0x180   :  { %5006 = vmatpush3.bf16.msra.mxu0 %v5005_v14  ;;  %5012 = vmatpush3.bf16.msra.mxu1 %v5011_v15  ;;  %v4219_v14 = vld [vmem:[%s6057_s4 + $0x1] ss:$0 sm:$0xff] }
 0x181   :  { %5013 = vmatprep.subr.bf16.mxu0 %v5149_v19  ;;  %5019 = vmatprep.subr.bf16.mxu1 %v5149_v19 }
 0x183   :  { %4676 = vmatmul.mubr.msk.f32.vlgmr.msra.gmra.mrb[16].mxu0 %vm59_vm0, %v5314_v46  ;;  %4687 = vmatmul.mubr.msk.f32.vlgmr.msra.gmra.mrb[16].mxu1 %vm59_vm0, %v5314_v46 }
 0x184   :  { %5015 = vmatpush3.bf16.msra.mxu0 %v5014_v21  ;;  %5021 = vmatpush3.bf16.msra.mxu1 %v5020_v22  ;;  %v4220_v22 = vld [vmem:[%s6057_s4 + $0x2] ss:$0 sm:$0xff] }
 0x185   :  { %5016 = vmatprep.subr.bf16.mxu0 %v5149_v19  ;;  %5022 = vmatprep.subr.bf16.mxu1 %v5149_v19 }
 0x186   :  { %4697 = vmatprep.mubr.msk.f32.mxu0 %vm5150_vm1, %v5151_v27  ;;  %4708 = vmatprep.mubr.msk.f32.mxu1 %vm5150_vm1, %v5151_v27 }
 0x188   :  { %5018 = vmatpush3.bf16.msra.mxu0 %v5017_v28  ;;  %5024 = vmatpush3.bf16.msra.mxu1 %v5023_v29 }
 0x189   :  { %5025 = vmatprep.subr.bf16.mxu0 %v5149_v19  ;;  %5031 = vmatprep.subr.bf16.mxu1 %v5149_v19 }
 0x18b   :  { %4698 = vmatmul.mubr.msk.f32.vlgmr.msra.gmra.mrb[18].mxu0 %vm59_vm0, %v5314_v46  ;;  %4709 = vmatmul.mubr.msk.f32.vlgmr.msra.gmra.mrb[18].mxu1 %vm59_vm0, %v5314_v46  ;;  %v1435_v46 = vld [vmem:[%s6060_s7 + $0xe0] sm:$0xff] }
 0x18c   :  { %5027 = vmatpush3.bf16.msra.mxu0 %v5026_v34  ;;  %5033 = vmatpush3.bf16.msra.mxu1 %v5032_v35  ;;  %v5044_v47 = vpack.c.bf16 %v1436_v44, %v1435_v46  ;;  %v4222_v35 = vld [vmem:[%s6057_s4 + $0x4] ss:$0 sm:$0xff]  ;;  %v4241_v46 = vld [vmem:[%s6059_s6 + $0x7] ss:$0 sm:$0xff] }
 0x18d   :  { %5028 = vmatprep.subr.bf16.mxu0 %v5149_v19  ;;  %5034 = vmatprep.subr.bf16.mxu1 %v5149_v19 }
 0x18e   :  { %4719 = vmatprep.mubr.msk.f32.mxu0 %vm5150_vm1, %v5151_v27  ;;  %4730 = vmatprep.mubr.msk.f32.mxu1 %vm5150_vm1, %v5151_v27 }
 0x190   :  { %5030 = vmatpush3.bf16.msra.mxu0 %v5029_v40  ;;  %5036 = vmatpush3.bf16.msra.mxu1 %v5035_v41 }
 0x191   :  { %5037 = vmatprep.subr.bf16.mxu0 %v5149_v19  ;;  %5043 = vmatprep.subr.bf16.mxu1 %v5149_v19 }
 0x193   :  { %4720 = vmatmul.mubr.msk.f32.vlgmr.msra.gmra.mrb[20].mxu0 %vm59_vm0, %v5387_v10  ;;  %4731 = vmatmul.mubr.msk.f32.vlgmr.msra.gmra.mrb[20].mxu1 %vm59_vm0, %v5387_v10 }
 0x194   :  { %5039 = vmatpush3.bf16.msra.mxu0 %v5038_v45  ;;  %5045 = vmatpush3.bf16.msra.mxu1 %v5044_v47  ;;  %v4224_v47 = vld [vmem:[%s6057_s4 + $0x6] ss:$0 sm:$0xff] }
 0x195   :  { %5040 = vmatprep.subr.bf16.mxu0 %v5149_v19  ;;  %5046 = vmatprep.subr.bf16.mxu1 %v5149_v19 }
 0x196   :  { %4741 = vmatprep.mubr.msk.f32.mxu0 %vm5150_vm1, %v5151_v27  ;;  %4752 = vmatprep.mubr.msk.f32.mxu1 %vm5150_vm1, %v5151_v27 }
 0x198   :  { %5042 = vmatpush3.bf16.msra.mxu0 %v5041_v52  ;;  %5048 = vmatpush3.bf16.msra.mxu1 %v5047_v53 }
 0x199   :  { %4755 = vmatprep.subr.mxu0 %v5151_v27  ;;  %4770 = vmatprep.subr.mxu1 %v5151_v27 }
 0x19b   :  { %4742 = vmatmul.mubr.msk.f32.vlgmr.msra.gmra.mrb[22].mxu0 %vm59_vm0, %v5387_v10  ;;  %4753 = vmatmul.mubr.msk.f32.vlgmr.msra.gmra.mrb[22].mxu1 %vm59_vm0, %v5387_v10 }
 0x19c   :  { %4757 = vmatprep.mubr.msk.f32.mxu0 %vm5150_vm1, %v5151_v27  ;;  %4772 = vmatprep.mubr.msk.f32.mxu1 %vm5150_vm1, %v5151_v27 }
 0x216   :  { %v262_v19 = vpop.f32.mrb[0].mxu0  ;;  %v332_v54 = vpop.f32.mrb[0].mxu1 }
 0x217   :  { %v4501_v55 = vpop.f32.mrb[1].mxu0  ;;  %v4512_v56 = vpop.f32.mrb[1].mxu1  ;;  %v263_v13 = vadd.f32 %v4218_v7, %v262_v19  ;;  %v333_v18 = vadd.f32 %v4219_v14, %v332_v54  ;;  %v4250_v54 = vld [vmem:[%s6061_s8] ss:$0 sm:$0xff] }
 0x218   :  { %v4251_v55 = vld [vmem:[%s6061_s8 + $0x1] ss:$0 sm:$0xff] }
 0x21e   :  { %v402_v57 = vpop.f32.mrb[2].mxu0  ;;  %v472_v58 = vpop.f32.mrb[2].mxu1 }
 0x21f   :  { %v4523_v59 = vpop.f32.mrb[3].mxu0  ;;  %v4534_v60 = vpop.f32.mrb[3].mxu1  ;;  %v403_v29 = vadd.f32 %v4220_v22, %v402_v57  ;;  %v473_v30 = vadd.f32 %v4221_v23, %v472_v58 }
 0x226   :  { %v545_v61 = vpop.f32.mrb[4].mxu0  ;;  %v615_v62 = vpop.f32.mrb[4].mxu1 }
 0x227   :  { %v4545_v63 = vpop.f32.mrb[5].mxu0  ;;  %v4556_v0 = vpop.f32.mrb[5].mxu1  ;;  %v546_v41 = vadd.f32 %v4222_v35, %v545_v61  ;;  %v616_v42 = vadd.f32 %v4223_v36, %v615_v62 }
 0x22e   :  { %v5708_v1 = vpop.f32.mrb[6].mxu0  ;;  %v5710_v10 = vpop.f32.mrb[6].mxu1 }
 0x22f   :  { %v4567_v2 = vpop.f32.mrb[7].mxu0  ;;  %v4578_v3 = vpop.f32.mrb[7].mxu1  ;;  %v686_v53 = vadd.f32 %v4224_v47, %v5708_v1  ;;  %v756_v19 = vadd.f32 %v4225_v48, %v5710_v10 }
 0x236   :  { %v913_v5 = vpop.f32.mrb[8].mxu0  ;;  %v983_v6 = vpop.f32.mrb[8].mxu1 }
 0x237   :  { %v914_v8 = vadd.f32 %v4234_v4, %v913_v5  ;;  %v4589_v9 = vpop.f32.mrb[9].mxu0  ;;  %v4600_v11 = vpop.f32.mrb[9].mxu1  ;;  %v984_v15 = vadd.f32 %v4235_v12, %v983_v6 }
 0x239   :  { %4756 = vmatpush3.xpose.msk.msra.mxu0 %vm2055_vm2, %v914_v8 }
 0x23a   :  { %4760 = vmatprep.subr.mxu0 %v5151_v27 }
 0x23c   :  { %4758 = vmatmul.mubr.msk.f32.vlgmr.msra.gmra.mrb[24].mxu0 %vm2055_vm2, %v263_v13 }
 0x23d   :  { %4761 = vmatpush3.xpose.msk.msra.mxu0 %vm2055_vm2, %v984_v15  ;;  %4762 = vmatprep.mubr.msk.f32.mxu0 %vm5150_vm1, %v5151_v27 }
 0x23e   :  { %v1053_v20 = vpop.f32.mrb[10].mxu0  ;;  %v1123_v21 = vpop.f32.mrb[10].mxu1  ;;  %4765 = vmatprep.subr.mxu0 %v5151_v27 }
 0x23f   :  { %v1054_v24 = vadd.f32 %v4236_v16, %v1053_v20  ;;  %v1124_v25 = vadd.f32 %v4237_v17, %v1123_v21  ;;  %v4611_v26 = vpop.f32.mrb[11].mxu0  ;;  %v4622_v28 = vpop.f32.mrb[11].mxu1 }
 0x240   :  { %4763 = vmatmul.mubr.msk.f32.vlgmr.msra.gmra.mrb[26].mxu0 %vm2055_vm2, %v333_v18 }
 0x241   :  { %4766 = vmatpush3.xpose.msk.msra.mxu0 %vm2055_vm2, %v1054_v24  ;;  %4771 = vmatpush3.xpose.msk.msra.mxu1 %vm2055_vm2, %v1124_v25 }
 0x242   :  { %4767 = vmatprep.mubr.msk.f32.mxu0 %vm5150_vm1, %v5151_v27  ;;  %4775 = vmatprep.subr.mxu0 %v5151_v27 }
 0x243   :  { %4780 = vmatprep.subr.mxu1 %v5151_v27 }
 0x244   :  { %4768 = vmatmul.mubr.msk.f32.vlgmr.msra.gmra.mrb[28].mxu0 %vm2055_vm2, %v403_v29  ;;  %4773 = vmatmul.mubr.msk.f32.vlgmr.msra.gmra.mrb[24].mxu1 %vm2055_vm2, %v473_v30 }
 0x245   :  { %4777 = vmatprep.mubr.msk.f32.mxu0 %vm5150_vm1, %v5151_v27  ;;  %4782 = vmatprep.mubr.msk.f32.mxu1 %vm5150_vm1, %v5151_v27 }
 0x246   :  { %v1193_v33 = vpop.f32.mrb[12].mxu0  ;;  %v1263_v34 = vpop.f32.mrb[12].mxu1 }
 0x247   :  { %v1194_v37 = vadd.f32 %v4238_v31, %v1193_v33  ;;  %v1264_v38 = vadd.f32 %v4239_v32, %v1263_v34  ;;  %v4633_v39 = vpop.f32.mrb[13].mxu0  ;;  %v4644_v40 = vpop.f32.mrb[13].mxu1 }
 0x249   :  { %4776 = vmatpush3.xpose.msk.msra.mxu0 %vm2055_vm2, %v1194_v37  ;;  %4781 = vmatpush3.xpose.msk.msra.mxu1 %vm2055_vm2, %v1264_v38 }
 0x24a   :  { %4785 = vmatprep.subr.mxu0 %v5151_v27  ;;  %4790 = vmatprep.subr.mxu1 %v5151_v27 }
 0x24c   :  { %4778 = vmatmul.mubr.msk.f32.vlgmr.msra.gmra.mrb[30].mxu0 %vm2055_vm2, %v546_v41  ;;  %4783 = vmatmul.mubr.msk.f32.vlgmr.msra.gmra.mrb[26].mxu1 %vm2055_vm2, %v616_v42 }
 0x24d   :  { %4787 = vmatprep.mubr.msk.f32.mxu0 %vm5150_vm1, %v5151_v27  ;;  %4792 = vmatprep.mubr.msk.f32.mxu1 %vm5150_vm1, %v5151_v27 }
 0x24e   :  { %v1333_v44 = vpop.f32.mrb[14].mxu0  ;;  %v1403_v45 = vpop.f32.mrb[14].mxu1 }
 0x24f   :  { %v1334_v49 = vadd.f32 %v4240_v43, %v1333_v44  ;;  %v1404_v50 = vadd.f32 %v4241_v46, %v1403_v45  ;;  %v4655_v51 = vpop.f32.mrb[15].mxu0  ;;  %v4666_v52 = vpop.f32.mrb[15].mxu1 }
 0x251   :  { %4786 = vmatpush3.xpose.msk.msra.mxu0 %vm2055_vm2, %v1334_v49  ;;  %4791 = vmatpush3.xpose.msk.msra.mxu1 %vm2055_vm2, %v1404_v50 }
 0x252   :  { %4795 = vmatprep.subr.mxu0 %v5151_v27  ;;  %4800 = vmatprep.subr.mxu1 %v5151_v27 }
 0x254   :  { %4788 = vmatmul.mubr.msk.f32.vlgmr.msra.gmra.mrb[32].mxu0 %vm2055_vm2, %v686_v53  ;;  %4793 = vmatmul.mubr.msk.f32.vlgmr.msra.gmra.mrb[28].mxu1 %vm2055_vm2, %v756_v19 }
 0x255   :  { %4797 = vmatprep.mubr.msk.f32.mxu0 %vm5150_vm1, %v5151_v27  ;;  %4802 = vmatprep.mubr.msk.f32.mxu1 %vm5150_vm1, %v5151_v27 }
 0x256   :  { %v1561_v56 = vpop.f32.mrb[16].mxu0  ;;  %v1631_v57 = vpop.f32.mrb[16].mxu1 }
 0x257   :  { %v1562_v58 = vadd.f32 %v4250_v54, %v1561_v56  ;;  %v1632_v59 = vadd.f32 %v4251_v55, %v1631_v57  ;;  %v4677_v60 = vpop.f32.mrb[17].mxu0  ;;  %v4688_v61 = vpop.f32.mrb[17].mxu1 }
 0x259   :  { %4796 = vmatpush3.msra.mxu0 %v1562_v58  ;;  %4801 = vmatpush3.msra.mxu1 %v1632_v59 }
 0x25a   :  { %4805 = vmatprep.subr.mxu0 %v5151_v27  ;;  %4810 = vmatprep.subr.mxu1 %v5151_v27 }
 0x25e   :  { %v5810_v62 = vpop.f32.mrb[18].mxu0  ;;  %v5812_v63 = vpop.f32.mrb[18].mxu1 }
 0x25f   :  { %v4699_v0 = vpop.f32.mrb[19].mxu0  ;;  %v4710_v1 = vpop.f32.mrb[19].mxu1 }
 0x266   :  { %v5814_v10 = vpop.f32.mrb[20].mxu0  ;;  %v5816_v2 = vpop.f32.mrb[20].mxu1 }
 0x267   :  { %v4721_v3 = vpop.f32.mrb[21].mxu0  ;;  %v4732_v4 = vpop.f32.mrb[21].mxu1 }
 0x26e   :  { %v5818_v5 = vpop.f32.mrb[22].mxu0  ;;  %v5820_v6 = vpop.f32.mrb[22].mxu1 }
 0x26f   :  { %v4743_v7 = vpop.f32.mrb[23].mxu0  ;;  %v4754_v8 = vpop.f32.mrb[23].mxu1 }
 0x30f   :  { %v2128_v9 = vpop.f32.mrb[24].mxu0 }
 0x310   :  { %v4759_v11 = vpop.f32.mrb[25].mxu0  ;;  %v2664_v12 = vsel %vm2055_vm2, %v2128_v9, -inf }
 0x311   :  { %2665 = vmax.xlane.f32.xlu0 %v2664_v12 }
 0x313   :  { %v2204_v13 = vpop.f32.mrb[26].mxu0 }
 0x314   :  { %v4764_v14 = vpop.f32.mrb[27].mxu0  ;;  %v2667_v15 = vsel %vm2055_vm2, %v2204_v13, -inf }
 0x315   :  { %2668 = vmax.xlane.f32.xlu1 %v2667_v15 }
 0x317   :  { %v2280_v16 = vpop.f32.mrb[28].mxu0  ;;  %v2356_v17 = vpop.f32.mrb[24].mxu1 }
 0x318   :  { %v4769_v18 = vpop.f32.mrb[29].mxu0  ;;  %v4774_v20 = vpop.f32.mrb[25].mxu1  ;;  %v2673_v21 = vsel %vm2055_vm2, %v2356_v17, -inf  ;;  %v2670_v22 = vsel %vm2055_vm2, %v2280_v16, -inf }
 0x319   :  { %2674 = vmax.xlane.f32.xlu1 %v2673_v21  ;;  %2671 = vmax.xlane.f32.xlu0 %v2670_v22  ;;  %v4252_v22 = vld [vmem:[%s6061_s8 + $0x2] ss:$0 sm:$0xff] }
 0x31f   :  { %v2432_v23 = vpop.f32.mrb[30].mxu0  ;;  %v2508_v24 = vpop.f32.mrb[26].mxu1 }
 0x320   :  { %v4779_v25 = vpop.f32.mrb[31].mxu0  ;;  %v4784_v26 = vpop.f32.mrb[27].mxu1  ;;  %v2679_v28 = vsel %vm2055_vm2, %v2508_v24, -inf  ;;  %v2676_v29 = vsel %vm2055_vm2, %v2432_v23, -inf }
 0x321   :  { %2680 = vmax.xlane.f32.xlu1 %v2679_v28  ;;  %2677 = vmax.xlane.f32.xlu0 %v2676_v29  ;;  %v1702_v25 = vadd.f32 %v4252_v22, %v5810_v62  ;;  %v4253_v26 = vld [vmem:[%s6061_s8 + $0x3] ss:$0 sm:$0xff]  ;;  %v4255_v62 = vld [vmem:[%s6061_s8 + $0x5] ss:$0 sm:$0xff] }
 0x327   :  { %v2584_v30 = vpop.f32.mrb[32].mxu0  ;;  %v2660_v31 = vpop.f32.mrb[28].mxu1 }
 0x328   :  { %v4789_v32 = vpop.f32.mrb[33].mxu0  ;;  %v4794_v33 = vpop.f32.mrb[29].mxu1  ;;  %v2685_v34 = vsel %vm2055_vm2, %v2660_v31, -inf  ;;  %v2682_v35 = vsel %vm2055_vm2, %v2584_v30, -inf }
 0x329   :  { %2686 = vmax.xlane.f32.xlu1 %v2685_v34  ;;  %2683 = vmax.xlane.f32.xlu0 %v2682_v35  ;;  %v4254_v34 = vld [vmem:[%s6061_s8 + $0x4] ss:$0 sm:$0xff] }
 0x39e   :  { %v2666_v36 = vpop.xlane.xlu0 %2665 }
 0x39f   :  { %v2688_v37 = vsub.f32 %v2128_v9, %v2666_v36  ;;  %v1912_v36 = vadd.f32 %v4255_v62, %v5816_v2 }
 0x3a1   :  { %v2696_v38 = vmul.f32 1.442695, %v2688_v37 }
 0x3a2   :  { %v2669_v39 = vpop.xlane.xlu1 %2668 }
 0x3a3   :  { %5083 = vpow2.f32 %v2696_v38  ;;  %v2689_v40 = vsub.f32 %v2204_v13, %v2669_v39  ;;  %v1842_v38 = vadd.f32 %v4254_v34, %v5814_v10  ;;  %v4257_v10 = vld [vmem:[%s6061_s8 + $0x7] ss:$0 sm:$0xff] }
 0x3a5   :  { %v2698_v41 = vmul.f32 1.442695, %v2689_v40 }
 0x3a6   :  { %v2675_v42 = vpop.xlane.xlu1 %2674  ;;  %v2672_v43 = vpop.xlane.xlu0 %2671 }
 0x3a7   :  { %5085 = vpow2.f32 %v2698_v41  ;;  %v2691_v46 = vsub.f32 %v2356_v17, %v2675_v42  ;;  %v2690_v44 = vsub.f32 %v2280_v16, %v2672_v43  ;;  %v4256_v41 = vld [vmem:[%s6061_s8 + $0x6] ss:$0 sm:$0xff] }
 0x3a9   :  { %v2702_v45 = vmul.f32 1.442695, %v2691_v46  ;;  %v2700_v47 = vmul.f32 1.442695, %v2690_v44  ;;  %v2052_v46 = vadd.f32 %v4257_v10, %v5820_v6 }
 0x3ab   :  { %5087 = vpow2.f32 %v2702_v45  ;;  %v1982_v45 = vadd.f32 %v4256_v41, %v5818_v5 }
 0x3ac   :  { %5089 = vpow2.f32 %v2700_v47 }
 0x3ad   :  { %v5084_v48 = vpop.eup %5083 }
 0x3ae   :  { %v2681_v49 = vpop.xlane.xlu1 %2680  ;;  %v2678_v50 = vpop.xlane.xlu0 %2677  ;;  %v2712_v51 = vsel %vm2055_vm2, %v5084_v48, 0.0 }
 0x3af   :  { %v2693_v52 = vsub.f32 %v2508_v24, %v2681_v49  ;;  %v2692_v53 = vsub.f32 %v2432_v23, %v2678_v50  ;;  %2713 = vadd.xlane.f32.xlu0 %v2712_v51  ;;  %v3336_v49 = vld [vmem:[%s6062_s9] sm:$0xff]  ;;  %v3337_v50 = vld [vmem:[%s6062_s9 + $0x8] sm:$0xff]  ;;  %v3338_v51 = vld [vmem:[%s6062_s9 + $0x10] sm:$0xff] }
 0x3b1   :  { %v5086_v19 = vpop.eup %5085  ;;  %v2706_v54 = vmul.f32 1.442695, %v2693_v52  ;;  %v2704_v55 = vmul.f32 1.442695, %v2692_v53 }
 0x3b2   :  { %v2715_v56 = vsel %vm2055_vm2, %v5086_v19, 0.0 }
 0x3b3   :  { %5091 = vpow2.f32 %v2706_v54  ;;  %2716 = vadd.xlane.f32.xlu1 %v2715_v56  ;;  %v3341_v56 = vld [vmem:[%s6062_s9 + $0x28] sm:$0xff] }
 0x3b4   :  { %5093 = vpow2.f32 %v2704_v55 }
 0x3b5   :  { %v5088_v57 = vpop.eup %5087 }
 0x3b6   :  { %v5090_v58 = vpop.eup %5089  ;;  %v2687_v59 = vpop.xlane.xlu1 %2686  ;;  %v2721_v61 = vsel %vm2055_vm2, %v5088_v57, 0.0 }
 0x3b7   :  { %v2684_v60 = vpop.xlane.xlu0 %2683  ;;  %v2695_v0 = vsub.f32 %v2660_v31, %v2687_v59  ;;  %2722 = vadd.xlane.f32.xlu1 %v2721_v61  ;;  %v2718_v3 = vsel %vm2055_vm2, %v5090_v58, 0.0  ;;  %v1772_v31 = vadd.f32 %v4253_v26, %v5812_v63 }
 0x3b8   :  { %v2694_v1 = vsub.f32 %v2584_v30, %v2684_v60  ;;  %2719 = vadd.xlane.f32.xlu0 %v2718_v3  ;;  %v3342_v3 = vld [vmem:[%s6062_s9 + $0x30] sm:$0xff] }
 0x3b9   :  { %v2710_v4 = vmul.f32 1.442695, %v2695_v0  ;;  %v3343_v0 = vld [vmem:[%s6062_s9 + $0x38] sm:$0xff] }
 0x3ba   :  { %v2708_v7 = vmul.f32 1.442695, %v2694_v1 }
 0x3bb   :  { %5095 = vpow2.f32 %v2710_v4 }
 0x3bc   :  { %5097 = vpow2.f32 %v2708_v7 }
 0x3bd   :  { %v5834_v8 = vpop.eup %5091 }
 0x3be   :  { %v5836_v9 = vpop.eup %5093  ;;  %v2727_v11 = vsel %vm2055_vm2, %v5834_v8, 0.0 }
 0x3bf   :  { %2728 = vadd.xlane.f32.xlu1 %v2727_v11  ;;  %v2724_v12 = vsel %vm2055_vm2, %v5836_v9, 0.0 }
 0x3c0   :  { %2725 = vadd.xlane.f32.xlu0 %v2724_v12 }
 0x3c5   :  { %v5842_v13 = vpop.eup %5095 }
 0x3c6   :  { %v5844_v14 = vpop.eup %5097  ;;  %v2733_v15 = vsel %vm2055_vm2, %v5842_v13, 0.0 }
 0x3c7   :  { %2734 = vadd.xlane.f32.xlu1 %v2733_v15  ;;  %v2730_v16 = vsel %vm2055_vm2, %v5844_v14, 0.0 }
 0x3c8   :  { %2731 = vadd.xlane.f32.xlu0 %v2730_v16 }
 0x43c   :  { %v2714_v17 = vpop.xlane.xlu0 %2713 }
 0x43d   :  { %5099 = vrcp.f32 %v2714_v17 }
 0x440   :  { %v2717_v18 = vpop.xlane.xlu1 %2716 }
 0x441   :  { %5101 = vrcp.f32 %v2717_v18 }
 0x444   :  { %v2723_v20 = vpop.xlane.xlu1 %2722 }
 0x445   :  { %5103 = vrcp.f32 %v2723_v20  ;;  %v2720_v21 = vpop.xlane.xlu0 %2719 }
 0x446   :  { %5105 = vrcp.f32 %v2720_v21 }
 0x447   :  { %v5100_v23 = vpop.eup %5099 }
 0x448   :  { %v2737_v24 = vmul.f32 %v5100_v23, %v5084_v48 }
 0x44a   :  { %4798 = vmatmul.mubr.msk.f32.vlgmr.msra.gmra.mrb[34].mxu0 %vm2055_vm2, %v2737_v24 }
 0x44b   :  { %v5102_v28 = vpop.eup %5101  ;;  %4806 = vmatpush3.msra.mxu0 %v1702_v25  ;;  %4807 = vmatprep.mubr.msk.f32.mxu0 %vm5150_vm1, %v5151_v27 }
 0x44c   :  { %v2739_v29 = vmul.f32 %v5102_v28, %v5086_v19  ;;  %v2729_v30 = vpop.xlane.xlu1 %2728  ;;  %4815 = vmatprep.subr.mxu0 %v5151_v27  ;;  %v3339_v19 = vld [vmem:[%s6062_s9 + $0x18] sm:$0xff] }
 0x44d   :  { %5107 = vrcp.f32 %v2729_v30  ;;  %v2726_v32 = vpop.xlane.xlu0 %2725 }
 0x44e   :  { %5109 = vrcp.f32 %v2726_v32  ;;  %4803 = vmatmul.mubr.msk.f32.vlgmr.msra.gmra.mrb[30].mxu1 %vm2055_vm2, %v2739_v29  ;;  %v4298_v29 = vld [vmem:[%s6063_s10] ss:$0 sm:$0xff] }
 0x44f   :  { %v5104_v33 = vpop.eup %5103  ;;  %4811 = vmatpush3.msra.mxu1 %v1772_v31  ;;  %4812 = vmatprep.mubr.msk.f32.mxu1 %vm5150_vm1, %v5151_v27 }
 0x450   :  { %v5106_v35 = vpop.eup %5105  ;;  %v2743_v63 = vmul.f32 %v5104_v33, %v5088_v57  ;;  %4820 = vmatprep.subr.mxu1 %v5151_v27 }
 0x451   :  { %v2741_v37 = vmul.f32 %v5106_v35, %v5090_v58  ;;  %v3340_v58 = vld [vmem:[%s6062_s9 + $0x20] sm:$0xff] }
 0x452   :  { %4813 = vmatmul.mubr.msk.f32.vlgmr.msra.gmra.mrb[32].mxu1 %vm2055_vm2, %v2743_v63  ;;  %v5123_v35 = vld [vmem:[%s6074_s26] sm:$0xff] }
 0x453   :  { %4808 = vmatmul.mubr.msk.f32.vlgmr.msra.gmra.mrb[36].mxu0 %vm2055_vm2, %v2741_v37  ;;  %4821 = vmatpush3.msra.mxu1 %v1912_v36 }
 0x454   :  { %4816 = vmatpush3.msra.mxu0 %v1842_v38  ;;  %v2735_v39 = vpop.xlane.xlu1 %2734  ;;  %4817 = vmatprep.mubr.msk.f32.mxu0 %vm5150_vm1, %v5151_v27 }
 0x455   :  { %5111 = vrcp.f32 %v2735_v39  ;;  %v2732_v40 = vpop.xlane.xlu0 %2731  ;;  %4822 = vmatprep.mubr.msk.f32.mxu1 %vm5150_vm1, %v5151_v27  ;;  %4825 = vmatprep.subr.mxu0 %v5151_v27 }
 0x456   :  { %5113 = vrcp.f32 %v2732_v40  ;;  %4830 = vmatprep.subr.mxu1 %v5151_v27 }
 0x457   :  { %v5108_v2 = vpop.eup %5107 }
 0x458   :  { %v5110_v42 = vpop.eup %5109  ;;  %v2747_v43 = vmul.f32 %v5108_v2, %v5834_v8 }
 0x459   :  { %v2745_v44 = vmul.f32 %v5110_v42, %v5836_v9 }
 0x45a   :  { %4823 = vmatmul.mubr.msk.f32.vlgmr.msra.gmra.mrb[34].mxu1 %vm2055_vm2, %v2747_v43 }
 0x45b   :  { %4818 = vmatmul.mubr.msk.f32.vlgmr.msra.gmra.mrb[38].mxu0 %vm2055_vm2, %v2745_v44  ;;  %4831 = vmatpush3.msra.mxu1 %v2052_v46 }
 0x45c   :  { %4826 = vmatpush3.msra.mxu0 %v1982_v45  ;;  %4827 = vmatprep.mubr.msk.f32.mxu0 %vm5150_vm1, %v5151_v27 }
 0x45d   :  { %4832 = vmatprep.mubr.msk.f32.mxu1 %vm5150_vm1, %v5151_v27  ;;  %4835 = vmatprep.subr.mxu0 %v5151_v27 }
 0x45e   :  { %4840 = vmatprep.subr.mxu1 %v5151_v27 }
 0x45f   :  { %v5112_v6 = vpop.eup %5111 }
 0x460   :  { %v5114_v47 = vpop.eup %5113  ;;  %v2751_v5 = vmul.f32 %v5112_v6, %v5842_v13  ;;  %v5124_v6 = vld [vmem:[%s6074_s26 + $0x8] sm:$0xff] }
 0x461   :  { %v2749_v48 = vmul.f32 %v5114_v47, %v5844_v14 }
 0x462   :  { %4833 = vmatmul.mubr.msk.f32.vlgmr.msra.gmra.mrb[36].mxu1 %vm2055_vm2, %v2751_v5 }
 0x463   :  { %4828 = vmatmul.mubr.msk.f32.vlgmr.msra.gmra.mrb[40].mxu0 %vm2055_vm2, %v2749_v48  ;;  %4842 = vmatprep.mubr.msk.f32.mxu1 %vm5150_vm1, %v5151_v27 }
 0x464   :  { %4837 = vmatprep.mubr.msk.f32.mxu0 %vm5150_vm1, %v5151_v27  ;;  %4836 = vmatpush3.msra.mxu0 %v3336_v49 }
 0x465   :  { %4845 = vmatprep.subr.mxu0 %v5151_v27  ;;  %4841 = vmatpush3.msra.mxu1 %v3337_v50 }
 0x466   :  { %4850 = vmatprep.subr.mxu1 %v5151_v27 }
 0x51d   :  { %v2821_v52 = vpop.f32.mrb[34].mxu0 }
 0x51e   :  { %v4799_v53 = vpop.f32.mrb[35].mxu0  ;;  %4838 = vmatmul.mubr.msk.f32.vlgmr.msra.gmra.mrb[42].mxu0 %vm2055_vm2, %v2821_v52 }
 0x51f   :  { %4846 = vmatpush3.msra.mxu0 %v3338_v51  ;;  %4847 = vmatprep.mubr.msk.f32.mxu0 %vm5150_vm1, %v5151_v27 }
 0x520   :  { %4855 = vmatprep.subr.mxu0 %v5151_v27 }
 0x521   :  { %v2894_v54 = vpop.f32.mrb[30].mxu1 }
 0x522   :  { %v4804_v55 = vpop.f32.mrb[31].mxu1  ;;  %4843 = vmatmul.mubr.msk.f32.vlgmr.msra.gmra.mrb[38].mxu1 %vm2055_vm2, %v2894_v54 }
 0x523   :  { %4851 = vmatpush3.msra.mxu1 %v3339_v19  ;;  %4852 = vmatprep.mubr.msk.f32.mxu1 %vm5150_vm1, %v5151_v27 }
 0x524   :  { %4860 = vmatprep.subr.mxu1 %v5151_v27 }
 0x525   :  { %v3040_v57 = vpop.f32.mrb[32].mxu1 }
 0x526   :  { %v2967_v59 = vpop.f32.mrb[36].mxu0  ;;  %v4814_v60 = vpop.f32.mrb[33].mxu1  ;;  %4853 = vmatmul.mubr.msk.f32.vlgmr.msra.gmra.mrb[40].mxu1 %vm2055_vm2, %v3040_v57  ;;  %v3997_v57 = vld [vmem:[%s6066_s13] sm:$0xff] }
 0x527   :  { %v4809_v61 = vpop.f32.mrb[37].mxu0  ;;  %4848 = vmatmul.mubr.msk.f32.vlgmr.msra.gmra.mrb[44].mxu0 %vm2055_vm2, %v2967_v59  ;;  %4861 = vmatpush3.msra.mxu1 %v3341_v56  ;;  %v3999_v60 = vld [vmem:[%s6066_s13 + $0x10] sm:$0xff] }
 0x528   :  { %4856 = vmatpush3.msra.mxu0 %v3340_v58  ;;  %4857 = vmatprep.mubr.msk.f32.mxu0 %vm5150_vm1, %v5151_v27  ;;  %v3998_v58 = vld [vmem:[%s6066_s13 + $0x8] sm:$0xff]  ;;  %v4000_v61 = vld [vmem:[%s6066_s13 + $0x18] sm:$0xff] }
 0x529   :  { %4862 = vmatprep.mubr.msk.f32.mxu1 %vm5150_vm1, %v5151_v27  ;;  %4865 = vmatprep.subr.mxu0 %v5151_v27  ;;  %v5049_v59 = vpack.c.bf16 %v3998_v58, %v3997_v57 }
 0x52a   :  { %4870 = vmatprep.subr.mxu1 %v5151_v27 }
 0x52d   :  { %v3186_v1 = vpop.f32.mrb[34].mxu1 }
 0x52e   :  { %v3113_v4 = vpop.f32.mrb[38].mxu0  ;;  %v4824_v7 = vpop.f32.mrb[35].mxu1  ;;  %4863 = vmatmul.mubr.msk.f32.vlgmr.msra.gmra.mrb[42].mxu1 %vm2055_vm2, %v3186_v1 }
 0x52f   :  { %v4819_v8 = vpop.f32.mrb[39].mxu0  ;;  %4858 = vmatmul.mubr.msk.f32.vlgmr.msra.gmra.mrb[46].mxu0 %vm2055_vm2, %v3113_v4  ;;  %4871 = vmatpush3.msra.mxu1 %v3343_v0  ;;  %v5053_v0 = vpack.c.bf16 %v4000_v61, %v3999_v60 }
 0x530   :  { %4866 = vmatpush3.msra.mxu0 %v3342_v3  ;;  %4867 = vmatprep.mubr.msk.f32.mxu0 %vm5150_vm1, %v5151_v27  ;;  %v4299_v8 = vld [vmem:[%s6064_s11] ss:$0 sm:$0xff] }
 0x531   :  { %4872 = vmatprep.mubr.msk.f32.mxu1 %vm5150_vm1, %v5151_v27  ;;  %5050 = vmatprep.subr.bf16.mxu0 %v5049_v59 }
 0x535   :  { %v3332_v9 = vpop.f32.mrb[36].mxu1 }
 0x536   :  { %v3259_v11 = vpop.f32.mrb[40].mxu0  ;;  %v4834_v12 = vpop.f32.mrb[37].mxu1  ;;  %4873 = vmatmul.mubr.msk.f32.vlgmr.msra.gmra.mrb[44].mxu1 %vm2055_vm2, %v3332_v9 }
 0x537   :  { %v4829_v13 = vpop.f32.mrb[41].mxu0  ;;  %4868 = vmatmul.mubr.msk.f32.vlgmr.msra.gmra.mrb[48].mxu0 %vm2055_vm2, %v3259_v11 }
 0x538   :  { %5052 = vmatpush3.bf16.msra.mxu0 %v5049_v59  ;;  %v4300_v13 = vld [vmem:[%s6065_s12] ss:$0 sm:$0xff] }
 0x539   :  { %5054 = vmatprep.subr.bf16.mxu0 %v5053_v0 }
 0x53c   :  { %5056 = vmatpush3.bf16.msra.mxu0 %v5053_v0 }
 0x5f1   :  { %v3413_v14 = vpop.f32.mrb[42].mxu0 }
 0x5f2   :  { %v4839_v15 = vpop.f32.mrb[43].mxu0  ;;  %v3928_v17 = vsel %vm59_vm0, %v3413_v14, 0.0 }
 0x5f5   :  { %v3486_v16 = vpop.f32.mrb[38].mxu1 }
 0x5f6   :  { %v3929_v18 = vsel %vm59_vm0, %v3486_v16, 0.0  ;;  %v4844_v20 = vpop.f32.mrb[39].mxu1 }
 0x5f7   :  { %v3930_v21 = vadd.f32 %v3929_v18, %v3928_v17 }
 0x5f9   :  { %v3632_v22 = vpop.f32.mrb[40].mxu1 }
 0x5fa   :  { %v3559_v23 = vpop.f32.mrb[44].mxu0  ;;  %v4854_v27 = vpop.f32.mrb[41].mxu1  ;;  %v3933_v28 = vsel %vm59_vm0, %v3632_v22, 0.0  ;;  %v4099_v22 = vld [vmem:[%s6068_s15] sm:$0xff] }
 0x5fb   :  { %v3931_v24 = vsel %vm59_vm0, %v3559_v23, 0.0  ;;  %v4849_v25 = vpop.f32.mrb[45].mxu0  ;;  %v4100_v23 = vld [vmem:[%s6068_s15 + $0x8] sm:$0xff] }
 0x5fc   :  { %v3932_v26 = vadd.f32 %v3931_v24, %v3930_v21  ;;  %v5057_v27 = vpack.c.bf16 %v4100_v23, %v4099_v22  ;;  %v4101_v24 = vld [vmem:[%s6068_s15 + $0x10] sm:$0xff]  ;;  %v4102_v25 = vld [vmem:[%s6068_s15 + $0x18] sm:$0xff] }
 0x5fe   :  { %v3934_v30 = vadd.f32 %v3933_v28, %v3932_v26  ;;  %5058 = vmatprep.subr.bf16.mxu1 %v5057_v27  ;;  %v5061_v26 = vpack.c.bf16 %v4102_v25, %v4101_v24  ;;  %v4103_v28 = vld [vmem:[%s6068_s15 + $0x20] sm:$0xff] }
 0x5ff   :  { %5060 = vmatpush3.bf16.msra.mxu1 %v5057_v27 }
 0x600   :  { %v3949_v31 = vadd.f32 %v4298_v29, %v3934_v30  ;;  %5062 = vmatprep.subr.bf16.mxu1 %v5061_v26 }
 0x601   :  { %v3778_v32 = vpop.f32.mrb[42].mxu1 }
 0x602   :  { %v3705_v62 = vpop.f32.mrb[46].mxu0  ;;  %v3936_v33 = vsel %vm59_vm0, %v3778_v32, 0.0  ;;  %v4864_v34 = vpop.f32.mrb[43].mxu1  ;;  %v5969_v63 = vadd.f32 %v5123_v35, %v3949_v31  ;;  %v4105_v31 = vld [vmem:[%s6068_s15 + $0x30] sm:$0xff]  ;;  %v4106_v32 = vld [vmem:[%s6068_s15 + $0x38] sm:$0xff] }
 0x603   :  { %v3935_v36 = vsel %vm59_vm0, %v3705_v62, 0.0  ;;  %v4859_v37 = vpop.f32.mrb[47].mxu0  ;;  %5064 = vmatpush3.bf16.msra.mxu1 %v5061_v26  ;;  %v5069_v62 = vpack.c.bf16 %v4106_v32, %v4105_v31 }
 0x604   :  { %v3937_v38 = vadd.f32 %v3936_v33, %v3935_v36  ;;  %v3953_v39 = vsel %vm59_vm0, %v5969_v63, 0.0  ;;  %v4301_v33 = vld [vmem:[%s6067_s14] ss:$0 sm:$0xff] }
 0x605   :  { %3954 = vadd.xlane.f32.xlu0 %v3953_v39 }
 0x609   :  { %v3924_v40 = vpop.f32.mrb[44].mxu1 }
 0x60a   :  { %v3851_v10 = vpop.f32.mrb[48].mxu0  ;;  %v4874_v2 = vpop.f32.mrb[45].mxu1  ;;  %v3940_v46 = vsel %vm59_vm0, %v3924_v40, 0.0 }
 0x60b   :  { %v3938_v41 = vsel %vm59_vm0, %v3851_v10, 0.0  ;;  %v4869_v42 = vpop.f32.mrb[49].mxu0 }
 0x60c   :  { %v3939_v43 = vadd.f32 %v3938_v41, %v3937_v38 }
 0x60e   :  { %v3941_v44 = vadd.f32 %v3940_v46, %v3939_v43 }
 0x610   :  { %v3950_v45 = vadd.f32 %v4298_v29, %v3941_v44  ;;  %v4104_v29 = vld [vmem:[%s6068_s15 + $0x28] sm:$0xff] }
 0x611   :  { %v5065_v30 = vpack.c.bf16 %v4104_v29, %v4103_v28 }
 0x612   :  { %v5979_v47 = vadd.f32 %v5124_v6, %v3950_v45  ;;  %v4304_v45 = vld [vmem:[%s6069_s16] ss:$0 sm:$0xff] }
 0x613   :  { %5066 = vmatprep.subr.bf16.mxu1 %v5065_v30 }
 0x614   :  { %v3956_v5 = vsel %vm59_vm0, %v5979_v47, 0.0  ;;  %5068 = vmatpush3.bf16.msra.mxu1 %v5065_v30 }
 0x615   :  { %3957 = vadd.xlane.f32.xlu1 %v3956_v5  ;;  %5070 = vmatprep.subr.bf16.mxu1 %v5069_v62 }
 0x618   :  { %5072 = vmatpush3.bf16.msra.mxu1 %v5069_v62 }
 0x692   :  { %v3955_v48 = vpop.xlane.xlu0 %3954 }
 0x693   :  { %v3959_v49 = vmul.f32 0.03125, %v3955_v48 }
 0x695   :  { %v3961_v50 = vsub.f32 %v5969_v63, %v3959_v49 }
 0x697   :  { %v3963_v51 = vmul.f32 %v3961_v50, %v3961_v50 }
 0x699   :  { %v3965_v52 = vsel %vm59_vm0, %v3963_v51, 0.0 }
 0x69a   :  { %3966 = vadd.xlane.f32.xlu0 %v3965_v52 }
 0x6a2   :  { %v3958_v53 = vpop.xlane.xlu1 %3957 }
 0x6a3   :  { %v3960_v19 = vmul.f32 0.03125, %v3958_v53 }
 0x6a5   :  { %v3962_v54 = vsub.f32 %v5979_v47, %v3960_v19 }
 0x6a7   :  { %v3964_v55 = vmul.f32 %v3962_v54, %v3962_v54 }
 0x6a9   :  { %v3968_v56 = vsel %vm59_vm0, %v3964_v55, 0.0 }
 0x6aa   :  { %3969 = vadd.xlane.f32.xlu1 %v3968_v56 }
 0x727   :  { %v3967_v1 = vpop.xlane.xlu0 %3966 }
 0x728   :  { %v3971_v3 = vmul.f32 0.03125, %v3967_v1 }
 0x72a   :  { %v3973_v4 = vadd.f32 1e-05, %v3971_v3 }
 0x72c   :  { %5115 = vrsqrt.f32 %v3973_v4 }
 0x736   :  { %v5116_v7 = vpop.eup %5115 }
 0x737   :  { %v3970_v9 = vpop.xlane.xlu1 %3969  ;;  %v3977_v11 = vmul.f32 %v5116_v7, %v3961_v50 }
 0x738   :  { %v3972_v12 = vmul.f32 0.03125, %v3970_v9 }
 0x739   :  { %v3986_v14 = vmul.f32 %v4299_v8, %v3977_v11 }
 0x73a   :  { %v3974_v15 = vadd.f32 1e-05, %v3972_v12 }
 0x73b   :  { %v3995_v16 = vadd.f32 %v4300_v13, %v3986_v14 }
 0x73c   :  { %5117 = vrsqrt.f32 %v3974_v15 }
 0x73d   :  { %4883 = vmatprep.mubr.msk.f32.mxu0 %vm59_vm0, %v3995_v16 }
 0x746   :  { %v5118_v17 = vpop.eup %5117 }
 0x747   :  { %v3978_v18 = vmul.f32 %v5118_v17, %v3962_v54 }
 0x749   :  { %v3987_v20 = vmul.f32 %v4299_v8, %v3978_v18 }
 0x74b   :  { %v3996_v21 = vadd.f32 %v4300_v13, %v3987_v20 }
 0x74d   :  { %4884 = vmatmul.mubr.msk.f32.vlgmr.msra.gmra.mrb[50].mxu0 %vm59_vm0, %v3996_v21 }
 0x820   :  { %v4885_v34 = vpop.f32.mrb[50].mxu0 }
 0x821   :  { %v4086_v35 = vadd.f32 %v4885_v34, %v4301_v33  ;;  %v4080_v36 = vpop.f32.mrb[51].mxu0 }
 0x822   :  { %v4081_v37 = vadd.f32 %v4301_v33, %v4080_v36 }
 0x823   :  { %v4092_v38 = vmul.f32 0.70710677, %v4086_v35  ;;  %v4090_v43 = vmul.f32 0.5, %v4086_v35 }
 0x824   :  { %v4091_v39 = vmul.f32 0.70710677, %v4081_v37  ;;  %v4089_v41 = vmul.f32 0.5, %v4081_v37 }
 0x825   :  { %5119 = verf.f32 %v4092_v38 }
 0x826   :  { %5121 = verf.f32 %v4091_v39 }
 0x82f   :  { %v5120_v40 = vpop.eup %5119 }
 0x830   :  { %v5122_v10 = vpop.eup %5121  ;;  %v4096_v2 = vadd.f32 1.0, %v5120_v40 }
 0x831   :  { %v4095_v42 = vadd.f32 1.0, %v5122_v10 }
 0x832   :  { %v4098_v44 = vmul.f32 %v4096_v2, %v4090_v43 }
 0x833   :  { %v4097_v46 = vmul.f32 %v4095_v42, %v4089_v41 }
 0x835   :  { %4902 = vmatprep.mubr.msk.f32.mxu1 %vm4114_vm3, %v4097_v46 }
 0x836   :  { %4903 = vmatmul.mubr.msk.f32.vlgmr.msra.gmra.mrb[46].mxu1 %vm4114_vm3, %v4098_v44 }
 0x909   :  { %v4904_v6 = vpop.f32.mrb[46].mxu1 }
 0x90a   :  { %v4193_v5 = vadd.f32 %v4904_v6, %v4304_v45  ;;  %v4187_v48 = vpop.f32.mrb[47].mxu1 }
 0x90b   :  { %v4188_v49 = vadd.f32 %v4304_v45, %v4187_v48 }
 0x90c   :  { %v4197_v50 = vadd.f32 %v4193_v5, %v5979_v47 }
 0x90d   :  { %v4196_v51 = vadd.f32 %v4188_v49, %v5969_v63 }
 0x90e   :  { %4199 = vst.msk [vmem:[#allocation2 + $0x8] sm:$0xff] %vm59_vm0, %v4197_v50 }
 0x90f   :  { %4198 = vst.msk [vmem:[#allocation2] sm:$0xff] %vm59_vm0, %v4196_v51 }
 0x910   :  { %5136 = shalt.err (!%p5133_p4)
}
 0x911   :  { %s5137_s4 = scalar_lea.hbm %s6070_s17, 256 }
 0x912   :  { %p5138_p5 = scmp.ne.s32.totalorder %s6070_s17, %s5137_s4  ;;  %p5141_p6 = scmp.lt.u32.totalorder %s5137_s4, %s6070_s17 }
 0x914   :  { %p5143_p7 = pnand %p5141_p6, %p5138_p5 }
 0x916   :  { %5146 = shalt.err (!%p5143_p7)
}
 0x917   :  { %s5153_s11 = smov 128   ;;  %s5154_s13 = smov 8  }
 0x918   :  { %4211 = dma.vmem_to_hbm [thread:$0]  %s4206_s29, 256, %s6070_s17, [#allocation3], %s5153_s11, %s5153_s11, %s5154_s13  }
 0x919   :  { %5147 = dma.done.wait [#allocation3], 256  }
 0x91a   :  { %5148 = vsyncadd [#allocation3], 4294967040 }
 0x91b   :  { %4215 = vsyncpa [#allocation3], 1 }

</bundles_post_ra>
